<compile_context>
chip_gen: v7x
topology: tpu7x:2x2x1
jax: 0.10.0
libtpu: 0.0.40
codegen_flags: <defaults>
</compile_context>

<pallas_src>
import math
import functools

import jax
import jax.numpy as jnp
from jax.experimental import pallas as pl
from jax.experimental.pallas import tpu as pltpu

_MASK_NEG = -1e30  # large finite negative, applied before the row max (no raw -inf)


# ---------------------------------------------------------------------------
# Fused kernel: single invocation, whole batch folded into rows.
# All "row" tensors are (rows, D) with D on the lanes.
# ---------------------------------------------------------------------------
def _fused_kernel(
    slab_ref,              # (R_in, 2D)  [f1 | f2] lane-concatenated, compute dtype
    w1k_ref, b1_ref,       # conv1 kron(I_B,W1,I_H): (R_out, R_in) cdt, (R_out, 1) f32
    wq_ref, bq_ref,        # query weight/bias, pre-scaled by 1/sqrt(D): (D, D), (1, D)
    wkv_ref, bkv_ref,      # fused [Wk^T | Wv^T]: (D, 2D), (1, 2D)
    wf_ref, bf_ref,        # forget gate: (D, D), (1, D)
    w2k_ref, b2_ref,       # conv2 kron(I_B,W2,I_H): (R_in, R_out) cdt, (R_in, 1) f32
    mask_ref,              # (R_out, R_out) f32 additive block-diagonal mask
    o_ref,                 # (R_in, D) f32 output
):
    cdt = w1k_ref.dtype                     # MXU-input dtype (bf16 or f32)
    d = wq_ref.shape[0]

    # ---- shared 1x1 conv on both features at once: (R_out,R_in)@(R_in,2D) --
    f12c = jnp.dot(w1k_ref[...], slab_ref[...],
                   preferred_element_type=jnp.float32) + b1_ref[...]
    f1c = f12c[:, :d]                       # (R_out, D) f32
    f2c = f12c[:, d:]                       # (R_out, D) f32, residual branch
    f1c_c = f1c.astype(cdt)
    f2c_c = f2c.astype(cdt)

    # ---- q (scale pre-folded) and fused k|v (N = 2D) ------------------------
    q = jnp.dot(f1c_c, wq_ref[...], preferred_element_type=jnp.float32) + bq_ref[...]
    kv = jnp.dot(f2c_c, wkv_ref[...], preferred_element_type=jnp.float32) + bkv_ref[...]
    k = kv[:, :d]
    v = kv[:, d:]

    # ---- block-diagonal attention over every (batch, channel) block at once
    # S = Q @ K^T (contract D directly, no materialized transpose).
    s = jax.lax.dot_general(q.astype(cdt), k.astype(cdt),
                            (((1,), (1,)), ((), ())),
                            preferred_element_type=jnp.float32)       # (R_out, R_out)
    s = s + mask_ref[...]                   # mask before row-max; diag blocks stay finite
    m = jnp.max(s, axis=-1, keepdims=True)
    p = jnp.exp(s - m)                      # masked entries underflow to exactly 0
    attn = p * pl.reciprocal(jnp.sum(p, axis=-1, keepdims=True), approx=True)

    out = jnp.dot(attn.astype(cdt), v.astype(cdt),
                  preferred_element_type=jnp.float32)                  # (R_out, D)

    # ---- forget gate + residual (f32) ---------------------------------------
    fg = jax.nn.sigmoid(
        jnp.dot(out.astype(cdt), wf_ref[...],
                preferred_element_type=jnp.float32) + bf_ref[...])
    gated = out * fg + f2c                                             # f32

    # ---- final 1x1 conv back to C_in channels --------------------------------
    res = jnp.dot(w2k_ref[...], gated.astype(cdt),
                  preferred_element_type=jnp.float32) + b2_ref[...]
    o_ref[...] = res.astype(o_ref.dtype)


def cross_attention_with_forget_gate(feature1, feature2, params,
                                     *, compute_dtype=jnp.bfloat16):
    """Forward pass of CrossAttentionWithForgetGate_0.

    feature1, feature2: (B, input_size, S, linear_dim).
    compute_dtype: dtype fed to the MXU (bf16 default on v5e/v6e/v7x; f32 for
    tight-tolerance checks). All accumulation stays f32.
    Returns (B, input_size, S, linear_dim) float32.
    """
    B, C_in, H, D = feature1.shape
    C_out = params["conv1_w"].shape[0]
    cdt = compute_dtype
    r_in, r_out = B * C_in * H, B * C_out * H
    scale = 1.0 / math.sqrt(D)

    # Lane-concatenated [f1 | f2] slab, pre-cast to the MXU input dtype
    # (halves the feature DMA on the bf16 path).
    slab = jnp.concatenate(
        [feature1.reshape(r_in, D), feature2.reshape(r_in, D)], axis=1
    ).astype(cdt)

    # 1x1 convs as kron(I_B, W, I_H) matmuls on (rows, D) slabs.
    # TODO(synk): at production C*H, tile rows with a reduction grid axis
    # instead of Kronecker-expanding (kron is O((B*C*H)^2), mostly zeros).
    eye_b = jnp.eye(B, dtype=jnp.float32)
    eye_h = jnp.eye(H, dtype=jnp.float32)
    w1 = params["conv1_w"].reshape(C_out, C_in)
    w2 = params["conv2_w"].reshape(C_in, C_out)
    w1k = jnp.kron(jnp.kron(eye_b, w1), eye_h).astype(cdt)            # (r_out, r_in)
    w2k = jnp.kron(jnp.kron(eye_b, w2), eye_h).astype(cdt)            # (r_in, r_out)
    b1 = jnp.tile(jnp.repeat(params["conv1_b"], H), B).reshape(r_out, 1).astype(jnp.float32)
    b2 = jnp.tile(jnp.repeat(params["conv2_b"], H), B).reshape(r_in, 1).astype(jnp.float32)

    # nn.Linear: y = x @ W^T + b. Fold the 1/sqrt(D) attention scale into the
    # query weights; fuse K|V weights into one N = 2D matmul.
    wq = (params["wq"].T * scale).astype(cdt)
    bq = (params["bq"] * scale).reshape(1, D).astype(jnp.float32)
    wkv = jnp.concatenate([params["wk"].T, params["wv"].T], axis=1).astype(cdt)
    bkv = jnp.concatenate([params["bk"], params["bv"]]).reshape(1, 2 * D).astype(jnp.float32)
    wf = params["wf"].T.astype(cdt)
    bf = params["bf"].reshape(1, D).astype(jnp.float32)

    # Additive block-diagonal attention mask: rows ordered (b, c_out, h), so
    # block id = row // H; each row's own block guarantees unmasked entries.
    blk = jnp.arange(r_out, dtype=jnp.int32) // H
    mask = jnp.where(blk[:, None] == blk[None, :], 0.0, _MASK_NEG).astype(jnp.float32)

    def spec(shape):
        return pl.BlockSpec(shape, lambda i: (0,) * len(shape))

    out2d = pl.pallas_call(
        _fused_kernel,
        out_shape=jax.ShapeDtypeStruct((r_in, D), jnp.float32),
        grid=(1,),
        in_specs=[
            spec((r_in, 2 * D)),                      # slab
            spec((r_out, r_in)), spec((r_out, 1)),    # conv1
            spec((D, D)), spec((1, D)),               # query (pre-scaled)
            spec((D, 2 * D)), spec((1, 2 * D)),       # fused key|value
            spec((D, D)), spec((1, D)),               # forget gate
            spec((r_in, r_out)), spec((r_in, 1)),     # conv2
            spec((r_out, r_out)),                     # block-diagonal mask
        ],
        out_specs=spec((r_in, D)),
        compiler_params=pltpu.CompilerParams(dimension_semantics=("arbitrary",)),
    )(slab, w1k, b1, wq, bq, wkv, bkv, wf, bf, w2k, b2, mask)

    return out2d.reshape(B, C_in, H, D)


# ---------------------------------------------------------------------------
# Pure-JAX reference (mirrors the PyTorch forward) for a correctness check
# ---------------------------------------------------------------------------
def reference_forward(feature1, feature2, params):
    D = feature1.shape[-1]

    def conv(x, w, b):
        w2 = w.reshape(w.shape[0], w.shape[1])
        return jnp.einsum("bchw,oc->bohw", x, w2) + b[None, :, None, None]

    f1c = conv(feature1, params["conv1_w"], params["conv1_b"])
    f2c = conv(feature2, params["conv1_w"], params["conv1_b"])

    def linear(x, w, b):
        return jnp.einsum("bchd,ed->bche", x, w) + b

    q = linear(f1c, params["wq"], params["bq"])
    k = linear(f2c, params["wk"], params["bk"])
    v = linear(f2c, params["wv"], params["bv"])

    scores = jnp.einsum("bchd,bcgd->bchg", q, k) / math.sqrt(D)
    attn = jax.nn.softmax(scores, axis=-1)
    out = jnp.einsum("bchg,bcgd->bchd", attn, v)
    fg = jax.nn.sigmoid(linear(out, params["wf"], params["bf"]))
    return conv(out * fg + f2c, params["conv2_w"], params["conv2_b"])


# ---------------------------------------------------------------------------
if __name__ == "__main__":
    # Small, module-consistent shapes:
    #   input_size=16, output_size=8, linear_dim=128, B=2, S=8
    B, C_IN, C_OUT, H, D = 2, 16, 8, 8, 128

    key = jax.random.PRNGKey(0)
    ks = jax.random.split(key, 14)
    s = 0.05  # small weight scale for numerical tameness

    params = {
        "conv1_w": jax.random.normal(ks[0], (C_OUT, C_IN, 1, 1), jnp.float32) * s,
        "conv1_b": jax.random.normal(ks[1], (C_OUT,), jnp.float32) * s,
        "conv2_w": jax.random.normal(ks[2], (C_IN, C_OUT, 1, 1), jnp.float32) * s,
        "conv2_b": jax.random.normal(ks[3], (C_IN,), jnp.float32) * s,
        "wq": jax.random.normal(ks[4], (D, D), jnp.float32) * s,
        "bq": jax.random.normal(ks[5], (D,), jnp.float32) * s,
        "wk": jax.random.normal(ks[6], (D, D), jnp.float32) * s,
        "bk": jax.random.normal(ks[7], (D,), jnp.float32) * s,
        "wv": jax.random.normal(ks[8], (D, D), jnp.float32) * s,
        "bv": jax.random.normal(ks[9], (D,), jnp.float32) * s,
        "wf": jax.random.normal(ks[10], (D, D), jnp.float32) * s,
        "bf": jax.random.normal(ks[11], (D,), jnp.float32) * s,
    }

    feature1 = jax.random.normal(ks[12], (B, C_IN, H, D), jnp.float32)
    feature2 = jax.random.normal(ks[13], (B, C_IN, H, D), jnp.float32)

    ref = reference_forward(feature1, feature2, params)

    # Default bf16-MXU path (v5e/v6e/v7x fast path), f32 accumulation.
    fwd = jax.jit(cross_attention_with_forget_gate)
    out = jax.block_until_ready(fwd(feature1, feature2, params))
    assert out.shape == (B, C_IN, H, D)
    assert jnp.allclose(out, ref, atol=3e-2, rtol=3e-2), "bf16 mismatch vs reference"

    # f32-MXU path (tight tolerance).
    fwd_f32 = jax.jit(functools.partial(cross_attention_with_forget_gate,
                                        compute_dtype=jnp.float32))
    out_f32 = jax.block_until_ready(fwd_f32(feature1, feature2, params))
    assert jnp.allclose(out_f32, ref, atol=1e-2, rtol=1e-2), "f32 mismatch vs reference"

    print("KERNEL_OK")
</pallas_src>

<mosaic_0001>
module attributes {stable_mosaic.version = 11 : i64} {
  func.func @_fused_kernel(%arg0: i32, %arg1: memref<256x256xbf16, #tpu.memory_space<vmem>>, %arg2: memref<128x256xbf16, #tpu.memory_space<vmem>>, %arg3: memref<128x1xf32, #tpu.memory_space<vmem>>, %arg4: memref<128x128xbf16, #tpu.memory_space<vmem>>, %arg5: memref<1x128xf32, #tpu.memory_space<vmem>>, %arg6: memref<128x256xbf16, #tpu.memory_space<vmem>>, %arg7: memref<1x256xf32, #tpu.memory_space<vmem>>, %arg8: memref<128x128xbf16, #tpu.memory_space<vmem>>, %arg9: memref<1x128xf32, #tpu.memory_space<vmem>>, %arg10: memref<256x128xbf16, #tpu.memory_space<vmem>>, %arg11: memref<256x1xf32, #tpu.memory_space<vmem>>, %arg12: memref<128x128xf32, #tpu.memory_space<vmem>>, %arg13: memref<256x128xf32, #tpu.memory_space<vmem>>) attributes {dimension_semantics = [#tpu.dimension_semantics<arbitrary>], iteration_bounds = array<i64: 1>, scalar_prefetch = 0 : i64, scratch_operands = 0 : i64, tpu.core_type = #tpu.core_type<tc>, window_params = [{pipeline_mode = #tpu.pipeline_mode<synchronous>, transform_indices = @transform_0, window_bounds = array<i64: 256, 256>}, {pipeline_mode = #tpu.pipeline_mode<synchronous>, transform_indices = @transform_1, window_bounds = array<i64: 128, 256>}, {pipeline_mode = #tpu.pipeline_mode<synchronous>, transform_indices = @transform_2, window_bounds = array<i64: 128, 1>}, {pipeline_mode = #tpu.pipeline_mode<synchronous>, transform_indices = @transform_3, window_bounds = array<i64: 128, 128>}, {pipeline_mode = #tpu.pipeline_mode<synchronous>, transform_indices = @transform_4, window_bounds = array<i64: 1, 128>}, {pipeline_mode = #tpu.pipeline_mode<synchronous>, transform_indices = @transform_5, window_bounds = array<i64: 128, 256>}, {pipeline_mode = #tpu.pipeline_mode<synchronous>, transform_indices = @transform_6, window_bounds = array<i64: 1, 256>}, {pipeline_mode = #tpu.pipeline_mode<synchronous>, transform_indices = @transform_7, window_bounds = array<i64: 128, 128>}, {pipeline_mode = #tpu.pipeline_mode<synchronous>, transform_indices = @transform_8, window_bounds = array<i64: 1, 128>}, {pipeline_mode = #tpu.pipeline_mode<synchronous>, transform_indices = @transform_9, window_bounds = array<i64: 256, 128>}, {pipeline_mode = #tpu.pipeline_mode<synchronous>, transform_indices = @transform_10, window_bounds = array<i64: 256, 1>}, {pipeline_mode = #tpu.pipeline_mode<synchronous>, transform_indices = @transform_11, window_bounds = array<i64: 128, 128>}, {pipeline_mode = #tpu.pipeline_mode<synchronous>, transform_indices = @transform_12, window_bounds = array<i64: 256, 128>}]} {
    %c0 = arith.constant 0 : index
    %c0_0 = arith.constant 0 : index
    %0 = vector.load %arg2[%c0, %c0_0] : memref<128x256xbf16, #tpu.memory_space<vmem>>, vector<128x256xbf16>
    %c0_1 = arith.constant 0 : index
    %c0_2 = arith.constant 0 : index
    %1 = vector.load %arg1[%c0_1, %c0_2] : memref<256x256xbf16, #tpu.memory_space<vmem>>, vector<256x256xbf16>
    %cst = arith.constant dense<0.000000e+00> : vector<128x256xf32>
    %2 = tpu.matmul %0, %1, %cst {dimension_numbers = #tpu.dot_dimension_numbers<[1], [0], [0], [1], [0, 0, 1, 1], [], []>} : vector<128x256xbf16>, vector<256x256xbf16>, vector<128x256xf32> -> vector<128x256xf32>
    %c0_3 = arith.constant 0 : index
    %c0_4 = arith.constant 0 : index
    %3 = vector.load %arg3[%c0_3, %c0_4] : memref<128x1xf32, #tpu.memory_space<vmem>>, vector<128x1xf32>
    %4 = vector.broadcast %3 : vector<128x1xf32> to vector<128x256xf32>
    %5 = arith.addf %2, %4 : vector<128x256xf32>
    %6 = vector.extract_strided_slice %5 {offsets = [0, 0], sizes = [128, 128], strides = [1, 1]} : vector<128x256xf32> to vector<128x128xf32>
    %7 = vector.extract_strided_slice %5 {offsets = [0, 128], sizes = [128, 128], strides = [1, 1]} : vector<128x256xf32> to vector<128x128xf32>
    %8 = arith.truncf %6 : vector<128x128xf32> to vector<128x128xbf16>
    %9 = arith.truncf %7 : vector<128x128xf32> to vector<128x128xbf16>
    %c0_5 = arith.constant 0 : index
    %c0_6 = arith.constant 0 : index
    %10 = vector.load %arg4[%c0_5, %c0_6] : memref<128x128xbf16, #tpu.memory_space<vmem>>, vector<128x128xbf16>
    %cst_7 = arith.constant dense<0.000000e+00> : vector<128x128xf32>
    %11 = tpu.matmul %8, %10, %cst_7 {dimension_numbers = #tpu.dot_dimension_numbers<[1], [0], [0], [1], [0, 0, 1, 1], [], []>} : vector<128x128xbf16>, vector<128x128xbf16>, vector<128x128xf32> -> vector<128x128xf32>
    %c0_8 = arith.constant 0 : index
    %c0_9 = arith.constant 0 : index
    %12 = vector.load %arg5[%c0_8, %c0_9] : memref<1x128xf32, #tpu.memory_space<vmem>>, vector<1x128xf32>
    %13 = vector.broadcast %12 : vector<1x128xf32> to vector<128x128xf32>
    %14 = arith.addf %11, %13 : vector<128x128xf32>
    %c0_10 = arith.constant 0 : index
    %c0_11 = arith.constant 0 : index
    %15 = vector.load %arg6[%c0_10, %c0_11] : memref<128x256xbf16, #tpu.memory_space<vmem>>, vector<128x256xbf16>
    %cst_12 = arith.constant dense<0.000000e+00> : vector<128x256xf32>
    %16 = tpu.matmul %9, %15, %cst_12 {dimension_numbers = #tpu.dot_dimension_numbers<[1], [0], [0], [1], [0, 0, 1, 1], [], []>} : vector<128x128xbf16>, vector<128x256xbf16>, vector<128x256xf32> -> vector<128x256xf32>
    %c0_13 = arith.constant 0 : index
    %c0_14 = arith.constant 0 : index
    %17 = vector.load %arg7[%c0_13, %c0_14] : memref<1x256xf32, #tpu.memory_space<vmem>>, vector<1x256xf32>
    %18 = vector.broadcast %17 : vector<1x256xf32> to vector<128x256xf32>
    %19 = arith.addf %16, %18 : vector<128x256xf32>
    %20 = vector.extract_strided_slice %19 {offsets = [0, 0], sizes = [128, 128], strides = [1, 1]} : vector<128x256xf32> to vector<128x128xf32>
    %21 = vector.extract_strided_slice %19 {offsets = [0, 128], sizes = [128, 128], strides = [1, 1]} : vector<128x256xf32> to vector<128x128xf32>
    %22 = arith.truncf %14 : vector<128x128xf32> to vector<128x128xbf16>
    %23 = arith.truncf %20 : vector<128x128xf32> to vector<128x128xbf16>
    %cst_15 = arith.constant dense<0.000000e+00> : vector<128x128xf32>
    %24 = tpu.matmul %22, %23, %cst_15 {dimension_numbers = #tpu.dot_dimension_numbers<[1], [1], [0], [0], [0, 0, 1, 0], [], []>} : vector<128x128xbf16>, vector<128x128xbf16>, vector<128x128xf32> -> vector<128x128xf32>
    %c0_16 = arith.constant 0 : index
    %c0_17 = arith.constant 0 : index
    %25 = vector.load %arg12[%c0_16, %c0_17] : memref<128x128xf32, #tpu.memory_space<vmem>>, vector<128x128xf32>
    %26 = arith.addf %24, %25 : vector<128x128xf32>
    %cst_18 = arith.constant dense<0xFF800000> : vector<128xf32>
    %27 = vector.multi_reduction <maximumf>, %26, %cst_18 [1] : vector<128x128xf32> to vector<128xf32>
    %28 = vector.shape_cast %27 : vector<128xf32> to vector<128x1xf32>
    %29 = vector.broadcast %28 : vector<128x1xf32> to vector<128x128xf32>
    %30 = arith.subf %26, %29 : vector<128x128xf32>
    %31 = math.exp %30 : vector<128x128xf32>
    %cst_19 = arith.constant dense<0.000000e+00> : vector<128xf32>
    %32 = vector.multi_reduction <add>, %31, %cst_19 [1] : vector<128x128xf32> to vector<128xf32>
    %33 = vector.shape_cast %32 : vector<128xf32> to vector<128x1xf32>
    %34 = tpu.reciprocal %33 {approx = true} : vector<128x1xf32> -> vector<128x1xf32>
    %35 = vector.broadcast %34 : vector<128x1xf32> to vector<128x128xf32>
    %36 = arith.mulf %31, %35 : vector<128x128xf32>
    %37 = arith.truncf %36 : vector<128x128xf32> to vector<128x128xbf16>
    %38 = arith.truncf %21 : vector<128x128xf32> to vector<128x128xbf16>
    %cst_20 = arith.constant dense<0.000000e+00> : vector<128x128xf32>
    %39 = tpu.matmul %37, %38, %cst_20 {dimension_numbers = #tpu.dot_dimension_numbers<[1], [0], [0], [1], [0, 0, 1, 1], [], []>} : vector<128x128xbf16>, vector<128x128xbf16>, vector<128x128xf32> -> vector<128x128xf32>
    %40 = arith.truncf %39 : vector<128x128xf32> to vector<128x128xbf16>
    %c0_21 = arith.constant 0 : index
    %c0_22 = arith.constant 0 : index
    %41 = vector.load %arg8[%c0_21, %c0_22] : memref<128x128xbf16, #tpu.memory_space<vmem>>, vector<128x128xbf16>
    %cst_23 = arith.constant dense<0.000000e+00> : vector<128x128xf32>
    %42 = tpu.matmul %40, %41, %cst_23 {dimension_numbers = #tpu.dot_dimension_numbers<[1], [0], [0], [1], [0, 0, 1, 1], [], []>} : vector<128x128xbf16>, vector<128x128xbf16>, vector<128x128xf32> -> vector<128x128xf32>
    %c0_24 = arith.constant 0 : index
    %c0_25 = arith.constant 0 : index
    %43 = vector.load %arg9[%c0_24, %c0_25] : memref<1x128xf32, #tpu.memory_space<vmem>>, vector<1x128xf32>
    %44 = vector.broadcast %43 : vector<1x128xf32> to vector<128x128xf32>
    %45 = arith.addf %42, %44 : vector<128x128xf32>
    %46 = arith.negf %45 : vector<128x128xf32>
    %47 = math.exp %46 : vector<128x128xf32>
    %cst_26 = arith.constant 1.000000e+00 : f32
    %48 = vector.broadcast %cst_26 : f32 to vector<128x128xf32>
    %49 = arith.addf %48, %47 : vector<128x128xf32>
    %50 = arith.divf %48, %49 : vector<128x128xf32>
    %51 = arith.mulf %39, %50 : vector<128x128xf32>
    %52 = arith.addf %51, %7 : vector<128x128xf32>
    %c0_27 = arith.constant 0 : index
    %c0_28 = arith.constant 0 : index
    %53 = vector.load %arg10[%c0_27, %c0_28] : memref<256x128xbf16, #tpu.memory_space<vmem>>, vector<256x128xbf16>
    %54 = arith.truncf %52 : vector<128x128xf32> to vector<128x128xbf16>
    %cst_29 = arith.constant dense<0.000000e+00> : vector<256x128xf32>
    %55 = tpu.matmul %53, %54, %cst_29 {dimension_numbers = #tpu.dot_dimension_numbers<[1], [0], [0], [1], [0, 0, 1, 1], [], []>} : vector<256x128xbf16>, vector<128x128xbf16>, vector<256x128xf32> -> vector<256x128xf32>
    %c0_30 = arith.constant 0 : index
    %c0_31 = arith.constant 0 : index
    %56 = vector.load %arg11[%c0_30, %c0_31] : memref<256x1xf32, #tpu.memory_space<vmem>>, vector<256x1xf32>
    %57 = vector.broadcast %56 : vector<256x1xf32> to vector<256x128xf32>
    %58 = arith.addf %55, %57 : vector<256x128xf32>
    %c0_32 = arith.constant 0 : index
    %c0_33 = arith.constant 0 : index
    %59 = vector.load %arg13[%c0_32, %c0_33] : memref<256x128xf32, #tpu.memory_space<vmem>>, vector<256x128xf32>
    tpu.vector_store %arg13[%c0_32, %c0_33], %58 {strides = array<i32>} : memref<256x128xf32, #tpu.memory_space<vmem>>, vector<256x128xf32>,
    return
  }
  func.func @transform_0(%arg0: i32) -> (i32, i32) {
    %c0_i32 = arith.constant 0 : i32
    %c0_i32_0 = arith.constant 0 : i32
    %c0_i32_1 = arith.constant 0 : i32
    return %c0_i32, %c0_i32_0 : i32, i32
  }
  func.func @transform_1(%arg0: i32) -> (i32, i32) {
    %c0_i32 = arith.constant 0 : i32
    %c0_i32_0 = arith.constant 0 : i32
    %c0_i32_1 = arith.constant 0 : i32
    return %c0_i32, %c0_i32_0 : i32, i32
  }
  func.func @transform_2(%arg0: i32) -> (i32, i32) {
    %c0_i32 = arith.constant 0 : i32
    %c0_i32_0 = arith.constant 0 : i32
    %c0_i32_1 = arith.constant 0 : i32
    return %c0_i32, %c0_i32_0 : i32, i32
  }
  func.func @transform_3(%arg0: i32) -> (i32, i32) {
    %c0_i32 = arith.constant 0 : i32
    %c0_i32_0 = arith.constant 0 : i32
    %c0_i32_1 = arith.constant 0 : i32
    return %c0_i32, %c0_i32_0 : i32, i32
  }
  func.func @transform_4(%arg0: i32) -> (i32, i32) {
    %c0_i32 = arith.constant 0 : i32
    %c0_i32_0 = arith.constant 0 : i32
    %c0_i32_1 = arith.constant 0 : i32
    return %c0_i32, %c0_i32_0 : i32, i32
  }
  func.func @transform_5(%arg0: i32) -> (i32, i32) {
    %c0_i32 = arith.constant 0 : i32
    %c0_i32_0 = arith.constant 0 : i32
    %c0_i32_1 = arith.constant 0 : i32
    return %c0_i32, %c0_i32_0 : i32, i32
  }
  func.func @transform_6(%arg0: i32) -> (i32, i32) {
    %c0_i32 = arith.constant 0 : i32
    %c0_i32_0 = arith.constant 0 : i32
    %c0_i32_1 = arith.constant 0 : i32
    return %c0_i32, %c0_i32_0 : i32, i32
  }
  func.func @transform_7(%arg0: i32) -> (i32, i32) {
    %c0_i32 = arith.constant 0 : i32
    %c0_i32_0 = arith.constant 0 : i32
    %c0_i32_1 = arith.constant 0 : i32
    return %c0_i32, %c0_i32_0 : i32, i32
  }
  func.func @transform_8(%arg0: i32) -> (i32, i32) {
    %c0_i32 = arith.constant 0 : i32
    %c0_i32_0 = arith.constant 0 : i32
    %c0_i32_1 = arith.constant 0 : i32
    return %c0_i32, %c0_i32_0 : i32, i32
  }
  func.func @transform_9(%arg0: i32) -> (i32, i32) {
    %c0_i32 = arith.constant 0 : i32
    %c0_i32_0 = arith.constant 0 : i32
    %c0_i32_1 = arith.constant 0 : i32
    return %c0_i32, %c0_i32_0 : i32, i32
  }
  func.func @transform_10(%arg0: i32) -> (i32, i32) {
    %c0_i32 = arith.constant 0 : i32
    %c0_i32_0 = arith.constant 0 : i32
    %c0_i32_1 = arith.constant 0 : i32
    return %c0_i32, %c0_i32_0 : i32, i32
  }
  func.func @transform_11(%arg0: i32) -> (i32, i32) {
    %c0_i32 = arith.constant 0 : i32
    %c0_i32_0 = arith.constant 0 : i32
    %c0_i32_1 = arith.constant 0 : i32
    return %c0_i32, %c0_i32_0 : i32, i32
  }
  func.func @transform_12(%arg0: i32) -> (i32, i32) {
    %c0_i32 = arith.constant 0 : i32
    %c0_i32_0 = arith.constant 0 : i32
    %c0_i32_1 = arith.constant 0 : i32
    return %c0_i32, %c0_i32_0 : i32, i32
  }
}

</mosaic_0001>

<bundles_post_ra>
// kernel: tile.13
= control target key start
LH: loop header
LB: loop body
LE: loop exit
PB: predicated region body
PF: predicated region fallthrough
CT: control target
= control target key end

     0   :  { %s131_s10 = smov 120   ;;  %s132_s11 = smov 104   ;;  %vm3_vm0 = vcmask 64512   ;;  %vm9_vm1 = vcmask 1048512   ;;  %vm15_vm2 = vcmask 982912   ;;  %vm21_vm3 = vcmask 917312   ;;  %s207_s0 = inlined_call_operand.vmem [shape: f32[16,8], index: 0, kind: input, shape index: {}]   ;;  %s208_s1 = inlined_call_operand.vmem [shape: f32[128], index: 1, kind: output, shape index: {}]  }
   0x1   :  { %v101_v0 = vld [vmem:[%s207_s0 + $0xf] sm:$0x1]   ;;  %v103_v1 = vld [vmem:[%s207_s0 + $0xd] sm:$0x1]   ;;  %v102_v2 = vld [vmem:[%s207_s0 + $0xe] sm:$0x1]  }
   0x2   :  { %7 = vrot.lane.b32.xlu0 %v101_v0, %s131_s10  ;;  %19 = vrot.lane.b32.xlu1 %v103_v1, %s132_s11  ;;  %v104_v3 = vld [vmem:[%s207_s0 + $0xc] sm:$0x1]   ;;  %s133_s16 = smov 112   ;;  %s134_s17 = smov 96   ;;  %v105_v4 = vld [vmem:[%s207_s0 + $0xb] sm:$0x1]  }
   0x3   :  { %v106_v5 = vld [vmem:[%s207_s0 + $0xa] sm:$0x1]   ;;  %v2_v6 = vld [vmem:[%s207_s0] sm:$0x1]   ;;  %s135_s24 = smov 88   ;;  %s136_s25 = smov 80  }
   0x4   :  { %4 = vst.msk [vmem:[#allocation0] sm:$0x1] %vm3_vm0, %v2_v6   ;;  %v107_v7 = vld [vmem:[%s207_s0 + $0x9] sm:$0x1]   ;;  %v108_v8 = vld [vmem:[%s207_s0 + $0x8] sm:$0x1]  }
   0x5   :  { %s137_s30 = smov 72   ;;  %s138_s2 = smov 64   ;;  %v109_v9 = vld [vmem:[%s207_s0 + $0x7] sm:$0x1]   ;;  %v110_v10 = vld [vmem:[%s207_s0 + $0x6] sm:$0x1]  }
   0x6   :  { %13 = vrot.lane.b32.xlu0 %v102_v2, %s133_s16  ;;  %25 = vrot.lane.b32.xlu1 %v104_v3, %s134_s17  ;;  %s139_s7 = smov 56   ;;  %s140_s8 = smov 48   ;;  %v111_v11 = vld [vmem:[%s207_s0 + $0x5] sm:$0x1]   ;;  %v112_v12 = vld [vmem:[%s207_s0 + $0x4] sm:$0x1]  }
   0x7   :  { %s141_s13 = smov 40   ;;  %s142_s14 = smov 32   ;;  %v113_v13 = vld [vmem:[%s207_s0 + $0x3] sm:$0x1]   ;;  %v114_v14 = vld [vmem:[%s207_s0 + $0x2] sm:$0x1]  }
   0x8   :  { %s143_s19 = smov 24   ;;  %s144_s20 = smov 16   ;;  %v115_v15 = vld [vmem:[%s207_s0 + $0x1] sm:$0x1]   ;;  %vm27_vm4 = vcmask 851712   ;;  %vm33_vm5 = vcmask 786112  }
   0x9   :  { %s145_s0 = smov 8   ;;  %vm39_vm6 = vcmask 720512   ;;  %vm45_vm7 = vcmask 654912   ;;  %vm51_vm8 = vcmask 589312   ;;  %vm57_vm9 = vcmask 523712  }
   0xa   :  { %31 = vrot.lane.b32.xlu0 %v105_v4, %s135_s24  ;;  %37 = vrot.lane.b32.xlu1 %v106_v5, %s136_s25  ;;  %vm63_vm10 = vcmask 458112   ;;  %vm69_vm11 = vcmask 392512   ;;  %vm75_vm12 = vcmask 326912   ;;  %vm81_vm13 = vcmask 261312  }
   0xb   :  { %vm87_vm14 = vcmask 195712   ;;  %vm93_vm15 = vcmask 130112  }
   0xe   :  { %43 = vrot.lane.b32.xlu0 %v107_v7, %s137_s30  ;;  %49 = vrot.lane.b32.xlu1 %v108_v8, %s138_s2 }
  0x12   :  { %55 = vrot.lane.b32.xlu0 %v109_v9, %s139_s7  ;;  %61 = vrot.lane.b32.xlu1 %v110_v10, %s140_s8 }
  0x16   :  { %67 = vrot.lane.b32.xlu0 %v111_v11, %s141_s13  ;;  %73 = vrot.lane.b32.xlu1 %v112_v12, %s142_s14 }
  0x1a   :  { %79 = vrot.lane.b32.xlu0 %v113_v13, %s143_s19  ;;  %85 = vrot.lane.b32.xlu1 %v114_v14, %s144_s20 }
  0x1e   :  { %91 = vrot.lane.b32.xlu0 %v115_v15, %s145_s0 }
  0x74   :  { %v8_v16 = vpop.permute.xlu0 %7   ;;  %v20_v17 = vpop.permute.xlu1 %19  }
  0x75   :  { %10 = vst.msk [vmem:[#allocation0] sm:$0x1] %vm9_vm1, %v8_v16  }
  0x78   :  { %v14_v18 = vpop.permute.xlu0 %13   ;;  %v26_v19 = vpop.permute.xlu1 %25  }
  0x79   :  { %16 = vst.msk [vmem:[#allocation0] sm:$0x1] %vm15_vm2, %v14_v18  }
  0x7a   :  { %22 = vst.msk [vmem:[#allocation0] sm:$0x1] %vm21_vm3, %v20_v17  }
  0x7b   :  { %28 = vst.msk [vmem:[#allocation0] sm:$0x1] %vm27_vm4, %v26_v19  }
  0x7c   :  { %v32_v20 = vpop.permute.xlu0 %31   ;;  %v38_v21 = vpop.permute.xlu1 %37  }
  0x7d   :  { %34 = vst.msk [vmem:[#allocation0] sm:$0x1] %vm33_vm5, %v32_v20  }
  0x7e   :  { %40 = vst.msk [vmem:[#allocation0] sm:$0x1] %vm39_vm6, %v38_v21  }
  0x80   :  { %v44_v22 = vpop.permute.xlu0 %43   ;;  %v50_v23 = vpop.permute.xlu1 %49  }
  0x81   :  { %46 = vst.msk [vmem:[#allocation0] sm:$0x1] %vm45_vm7, %v44_v22  }
  0x82   :  { %52 = vst.msk [vmem:[#allocation0] sm:$0x1] %vm51_vm8, %v50_v23  }
  0x84   :  { %v56_v24 = vpop.permute.xlu0 %55   ;;  %v62_v25 = vpop.permute.xlu1 %61  }
  0x85   :  { %58 = vst.msk [vmem:[#allocation0] sm:$0x1] %vm57_vm9, %v56_v24  }
  0x86   :  { %64 = vst.msk [vmem:[#allocation0] sm:$0x1] %vm63_vm10, %v62_v25  }
  0x88   :  { %v68_v26 = vpop.permute.xlu0 %67   ;;  %v74_v27 = vpop.permute.xlu1 %73  }
  0x89   :  { %70 = vst.msk [vmem:[#allocation0] sm:$0x1] %vm69_vm11, %v68_v26  }
  0x8a   :  { %76 = vst.msk [vmem:[#allocation0] sm:$0x1] %vm75_vm12, %v74_v27  }
  0x8c   :  { %v80_v28 = vpop.permute.xlu0 %79   ;;  %v86_v29 = vpop.permute.xlu1 %85  }
  0x8d   :  { %82 = vst.msk [vmem:[#allocation0] sm:$0x1] %vm81_vm13, %v80_v28  }
  0x8e   :  { %88 = vst.msk [vmem:[#allocation0] sm:$0x1] %vm87_vm14, %v86_v29  }
  0x90   :  { %v92_v30 = vpop.permute.xlu0 %91  }
  0x91   :  { %94 = vst.msk [vmem:[#allocation0] sm:$0x1] %vm93_vm15, %v92_v30  }
  0x98   :  { %v98_v31 = vld [vmem:[#allocation0] sm:$0x1] }
  0x99   :  { %100 = vst [vmem:[%s208_s1] sm:$0x1] %v98_v31 }

// kernel: tile.14
= control target key start
LH: loop header
LB: loop body
LE: loop exit
PB: predicated region body
PF: predicated region fallthrough
CT: control target
= control target key end

     0   :  { %s22_s0 = inlined_call_operand.vmem [shape: f32[128], index: 0, kind: input, shape index: {}]   ;;  %s23_s1 = inlined_call_operand.vmem [shape: f32[2,128], index: 1, kind: output, shape index: {}]  }
   0x1   :  { %v4_v0 = vld [vmem:[%s22_s0] ss:$0 sm:$0xff] }
   0x2   :  { %5 = vst [vmem:[%s23_s1] sm:$0x3] %v4_v0 }

// kernel: tile.9
= control target key start
LH: loop header
LB: loop body
LE: loop exit
PB: predicated region body
PF: predicated region fallthrough
CT: control target
= control target key end

     0   :  { %s67_s10 = smov 56   ;;  %s68_s11 = smov 40   ;;  %vm3_vm0 = vcmask 64512   ;;  %vm9_vm1 = vcmask 523712   ;;  %vm15_vm2 = vcmask 458112   ;;  %vm21_vm3 = vcmask 392512   ;;  %s111_s0 = inlined_call_operand.vmem [shape: f32[8,8], index: 0, kind: input, shape index: {}]   ;;  %s112_s1 = inlined_call_operand.vmem [shape: f32[64], index: 1, kind: output, shape index: {}]  }
   0x1   :  { %v53_v0 = vld [vmem:[%s111_s0 + $0x7] sm:$0x1]   ;;  %v55_v1 = vld [vmem:[%s111_s0 + $0x5] sm:$0x1]   ;;  %v54_v2 = vld [vmem:[%s111_s0 + $0x6] sm:$0x1]  }
   0x2   :  { %7 = vrot.lane.b32.xlu0 %v53_v0, %s67_s10  ;;  %19 = vrot.lane.b32.xlu1 %v55_v1, %s68_s11  ;;  %v56_v3 = vld [vmem:[%s111_s0 + $0x4] sm:$0x1]   ;;  %v2_v4 = vld [vmem:[%s111_s0] sm:$0x1]   ;;  %s69_s18 = smov 48   ;;  %s70_s19 = smov 32  }
   0x3   :  { %4 = vst.msk [vmem:[#allocation0] sm:$0x1] %vm3_vm0, %v2_v4   ;;  %v57_v5 = vld [vmem:[%s111_s0 + $0x3] sm:$0x1]   ;;  %v58_v6 = vld [vmem:[%s111_s0 + $0x2] sm:$0x1]  }
   0x4   :  { %s71_s24 = smov 24   ;;  %s72_s25 = smov 16   ;;  %v59_v7 = vld [vmem:[%s111_s0 + $0x1] sm:$0x1]   ;;  %vm27_vm4 = vcmask 326912   ;;  %vm33_vm5 = vcmask 261312  }
   0x5   :  { %s73_s0 = smov 8   ;;  %vm39_vm6 = vcmask 195712   ;;  %vm45_vm7 = vcmask 130112  }
   0x6   :  { %13 = vrot.lane.b32.xlu0 %v54_v2, %s69_s18  ;;  %25 = vrot.lane.b32.xlu1 %v56_v3, %s70_s19 }
   0xa   :  { %31 = vrot.lane.b32.xlu0 %v57_v5, %s71_s24  ;;  %37 = vrot.lane.b32.xlu1 %v58_v6, %s72_s25 }
   0xe   :  { %43 = vrot.lane.b32.xlu0 %v59_v7, %s73_s0 }
  0x74   :  { %v8_v8 = vpop.permute.xlu0 %7   ;;  %v20_v9 = vpop.permute.xlu1 %19  }
  0x75   :  { %10 = vst.msk [vmem:[#allocation0] sm:$0x1] %vm9_vm1, %v8_v8  }
  0x78   :  { %v14_v10 = vpop.permute.xlu0 %13   ;;  %v26_v11 = vpop.permute.xlu1 %25  }
  0x79   :  { %16 = vst.msk [vmem:[#allocation0] sm:$0x1] %vm15_vm2, %v14_v10  }
  0x7a   :  { %22 = vst.msk [vmem:[#allocation0] sm:$0x1] %vm21_vm3, %v20_v9  }
  0x7b   :  { %28 = vst.msk [vmem:[#allocation0] sm:$0x1] %vm27_vm4, %v26_v11  }
  0x7c   :  { %v32_v12 = vpop.permute.xlu0 %31   ;;  %v38_v13 = vpop.permute.xlu1 %37  }
  0x7d   :  { %34 = vst.msk [vmem:[#allocation0] sm:$0x1] %vm33_vm5, %v32_v12  }
  0x7e   :  { %40 = vst.msk [vmem:[#allocation0] sm:$0x1] %vm39_vm6, %v38_v13  }
  0x80   :  { %v44_v14 = vpop.permute.xlu0 %43  }
  0x81   :  { %46 = vst.msk [vmem:[#allocation0] sm:$0x1] %vm45_vm7, %v44_v14  }
  0x88   :  { %v50_v15 = vld [vmem:[#allocation0] sm:$0x1] }
  0x89   :  { %52 = vst [vmem:[%s112_s1] sm:$0x1] %v50_v15 }

// kernel: tile.10
= control target key start
LH: loop header
LB: loop body
LE: loop exit
PB: predicated region body
PF: predicated region fallthrough
CT: control target
= control target key end

     0   :  { %s22_s0 = inlined_call_operand.vmem [shape: f32[64], index: 0, kind: input, shape index: {}]   ;;  %s23_s1 = inlined_call_operand.vmem [shape: f32[2,64], index: 1, kind: output, shape index: {}]  }
   0x1   :  { %v4_v0 = vld [vmem:[%s22_s0] ss:$0 sm:$0xff] }
   0x2   :  { %5 = vst [vmem:[%s23_s1] sm:$0x3] %v4_v0 }

// kernel: tile.0
= control target key start
LH: loop header
LB: loop body
LE: loop exit
PB: predicated region body
PF: predicated region fallthrough
CT: control target
= control target key end

     0   :  { %s706_s8 = smov 125   ;;  %s707_s9 = smov 126   ;;  %vm7_vm0 = vcmask 7168   ;;  %s1293_s0 = inlined_call_operand.vmem [shape: f32[2,64], index: 0, kind: input, shape index: {}]   ;;  %s1294_s1 = inlined_call_operand.vmem [shape: f32[128,1], index: 1, kind: output, shape index: {}]  }
   0x1   :  { %v4_v0 = vld [vmem:[%s1293_s0] sm:$0x3]  ;;  %s705_s0 = smov 127   ;;  %s708_s10 = smov 124  }
   0x2   :  { %5 = vst [vmem:[#allocation0] sm:$0x3] %v4_v0  ;;  %s709_s11 = smov 123   ;;  %s710_s12 = smov 122  }
   0x3   :  { %s711_s13 = smov 121   ;;  %s712_s14 = smov 120  }
   0x4   :  { %s713_s15 = smov 119   ;;  %s714_s16 = smov 118  }
   0x5   :  { %s715_s17 = smov 117   ;;  %s716_s18 = smov 116  }
   0x6   :  { %s717_s19 = smov 115   ;;  %s718_s20 = smov 114  }
   0x7   :  { %s719_s21 = smov 113   ;;  %s720_s22 = smov 112  }
   0x8   :  { %s721_s23 = smov 111   ;;  %s722_s24 = smov 110  }
   0x9   :  { %v11_v1 = vld [vmem:[#allocation0] sm:$0x3]   ;;  %s723_s25 = smov 109   ;;  %s724_s26 = smov 108  }
   0xa   :  { %v27_v2 = vld [vmem:[#allocation0] sm:$0x3]   ;;  %12 = vrot.lane.b32.xlu0 %v11_v1, %s705_s0  ;;  %s725_s27 = smov 107   ;;  %s726_s28 = smov 106  }
   0xb   :  { %28 = vrot.lane.b32.xlu1 %v27_v2, %s706_s8  ;;  %v19_v3 = vld [vmem:[#allocation0] sm:$0x3]   ;;  %s727_s29 = smov 105   ;;  %s728_s30 = smov 104  }
   0xc   :  { %v35_v4 = vld [vmem:[#allocation0] sm:$0x3]   ;;  %s729_s2 = smov 103   ;;  %s730_s3 = smov 102  }
   0xd   :  { %v43_v5 = vld [vmem:[#allocation0] sm:$0x3]   ;;  %s731_s4 = smov 101   ;;  %s732_s5 = smov 100  }
   0xe   :  { %20 = vrot.lane.b32.xlu0 %v19_v3, %s707_s9  ;;  %v51_v6 = vld [vmem:[#allocation0] sm:$0x3]   ;;  %s733_s6 = smov 99   ;;  %s734_s7 = smov 98  }
   0xf   :  { %36 = vrot.lane.b32.xlu1 %v35_v4, %s708_s10  ;;  %v59_v7 = vld [vmem:[#allocation0] sm:$0x3]   ;;  %s735_s0 = smov 97   ;;  %s736_s8 = smov 96  }
  0x10   :  { %v67_v8 = vld [vmem:[#allocation0] sm:$0x3]   ;;  %s737_s9 = smov 95   ;;  %s738_s10 = smov 94  }
  0x11   :  { %v75_v9 = vld [vmem:[#allocation0] sm:$0x3]  }
  0x12   :  { %44 = vrot.lane.b32.xlu0 %v43_v5, %s709_s11  ;;  %v83_v10 = vld [vmem:[#allocation0] sm:$0x3]   ;;  %s739_s11 = smov 93  }
  0x13   :  { %52 = vrot.lane.b32.xlu1 %v51_v6, %s710_s12  ;;  %v91_v11 = vld [vmem:[#allocation0] sm:$0x3]   ;;  %s740_s12 = smov 92  }
  0x14   :  { %v99_v12 = vld [vmem:[#allocation0] sm:$0x3]  }
  0x15   :  { %v107_v13 = vld [vmem:[#allocation0] sm:$0x3]  }
  0x16   :  { %60 = vrot.lane.b32.xlu0 %v59_v7, %s711_s13  ;;  %v115_v14 = vld [vmem:[#allocation0] sm:$0x3]   ;;  %s741_s13 = smov 91  }
  0x17   :  { %68 = vrot.lane.b32.xlu1 %v67_v8, %s712_s14  ;;  %v123_v15 = vld [vmem:[#allocation0] sm:$0x3]   ;;  %s742_s14 = smov 90  }
  0x18   :  { %v131_v16 = vld [vmem:[#allocation0] sm:$0x3]  }
  0x19   :  { %v139_v17 = vld [vmem:[#allocation0] sm:$0x3]  }
  0x1a   :  { %76 = vrot.lane.b32.xlu0 %v75_v9, %s713_s15  ;;  %v147_v18 = vld [vmem:[#allocation0] sm:$0x3]   ;;  %s743_s15 = smov 89  }
  0x1b   :  { %84 = vrot.lane.b32.xlu1 %v83_v10, %s714_s16  ;;  %v155_v19 = vld [vmem:[#allocation0] sm:$0x3]   ;;  %s744_s16 = smov 88  }
  0x1c   :  { %v163_v20 = vld [vmem:[#allocation0] sm:$0x3]  }
  0x1d   :  { %v171_v21 = vld [vmem:[#allocation0] sm:$0x3]  }
  0x1e   :  { %92 = vrot.lane.b32.xlu0 %v91_v11, %s715_s17  ;;  %v179_v22 = vld [vmem:[#allocation0] sm:$0x3]   ;;  %s745_s17 = smov 87  }
  0x1f   :  { %100 = vrot.lane.b32.xlu1 %v99_v12, %s716_s18  ;;  %v187_v23 = vld [vmem:[#allocation0] sm:$0x3]   ;;  %s746_s18 = smov 86  }
  0x20   :  { %v195_v24 = vld [vmem:[#allocation0] sm:$0x3]  }
  0x21   :  { %v203_v25 = vld [vmem:[#allocation0] sm:$0x3]  }
  0x22   :  { %108 = vrot.lane.b32.xlu0 %v107_v13, %s717_s19  ;;  %v211_v26 = vld [vmem:[#allocation0] sm:$0x3]   ;;  %s747_s19 = smov 85  }
  0x23   :  { %116 = vrot.lane.b32.xlu1 %v115_v14, %s718_s20  ;;  %v219_v27 = vld [vmem:[#allocation0] sm:$0x3]   ;;  %s748_s20 = smov 84  }
  0x24   :  { %v227_v28 = vld [vmem:[#allocation0] sm:$0x3]  }
  0x25   :  { %v235_v29 = vld [vmem:[#allocation0] sm:$0x3]  }
  0x26   :  { %124 = vrot.lane.b32.xlu0 %v123_v15, %s719_s21  ;;  %v243_v30 = vld [vmem:[#allocation0] sm:$0x3]   ;;  %s749_s21 = smov 83  }
  0x27   :  { %132 = vrot.lane.b32.xlu1 %v131_v16, %s720_s22  ;;  %v251_v31 = vld [vmem:[#allocation0] sm:$0x3]   ;;  %s750_s22 = smov 82  }
  0x28   :  { %v259_v32 = vld [vmem:[#allocation0] sm:$0x3]  }
  0x29   :  { %v267_v33 = vld [vmem:[#allocation0] sm:$0x3]  }
  0x2a   :  { %140 = vrot.lane.b32.xlu0 %v139_v17, %s721_s23  ;;  %v275_v34 = vld [vmem:[#allocation0] sm:$0x3]   ;;  %s751_s23 = smov 81  }
  0x2b   :  { %148 = vrot.lane.b32.xlu1 %v147_v18, %s722_s24  ;;  %v283_v35 = vld [vmem:[#allocation0] sm:$0x3]   ;;  %s752_s24 = smov 80  }
  0x2c   :  { %v291_v36 = vld [vmem:[#allocation0] sm:$0x3]  }
  0x2d   :  { %v299_v37 = vld [vmem:[#allocation0] sm:$0x3]  }
  0x2e   :  { %156 = vrot.lane.b32.xlu0 %v155_v19, %s723_s25  ;;  %v307_v38 = vld [vmem:[#allocation0] sm:$0x3]   ;;  %s753_s25 = smov 79  }
  0x2f   :  { %164 = vrot.lane.b32.xlu1 %v163_v20, %s724_s26  ;;  %v315_v39 = vld [vmem:[#allocation0] sm:$0x3]   ;;  %s754_s26 = smov 78  }
  0x30   :  { %v323_v40 = vld [vmem:[#allocation0] sm:$0x3]  }
  0x31   :  { %v331_v41 = vld [vmem:[#allocation0] sm:$0x3]  }
  0x32   :  { %172 = vrot.lane.b32.xlu0 %v171_v21, %s725_s27  ;;  %v339_v42 = vld [vmem:[#allocation0] sm:$0x3]   ;;  %s755_s27 = smov 77  }
  0x33   :  { %180 = vrot.lane.b32.xlu1 %v179_v22, %s726_s28  ;;  %v347_v43 = vld [vmem:[#allocation0] sm:$0x3]   ;;  %s756_s28 = smov 76  }
  0x34   :  { %v355_v44 = vld [vmem:[#allocation0] sm:$0x3]  }
  0x35   :  { %v363_v45 = vld [vmem:[#allocation0] sm:$0x3]  }
  0x36   :  { %188 = vrot.lane.b32.xlu0 %v187_v23, %s727_s29  ;;  %v371_v46 = vld [vmem:[#allocation0] sm:$0x3]   ;;  %s757_s29 = smov 75  }
  0x37   :  { %196 = vrot.lane.b32.xlu1 %v195_v24, %s728_s30  ;;  %v379_v47 = vld [vmem:[#allocation0] sm:$0x3]   ;;  %s758_s30 = smov 74  }
  0x38   :  { %v387_v48 = vld [vmem:[#allocation0] sm:$0x3]  }
  0x39   :  { %v395_v49 = vld [vmem:[#allocation0] sm:$0x3]  }
  0x3a   :  { %204 = vrot.lane.b32.xlu0 %v203_v25, %s729_s2  ;;  %v403_v50 = vld [vmem:[#allocation0] sm:$0x3]   ;;  %s759_s2 = smov 73  }
  0x3b   :  { %212 = vrot.lane.b32.xlu1 %v211_v26, %s730_s3  ;;  %v411_v51 = vld [vmem:[#allocation0] sm:$0x3]   ;;  %s760_s3 = smov 72  }
  0x3c   :  { %v419_v52 = vld [vmem:[#allocation0] sm:$0x3]  }
  0x3d   :  { %v427_v53 = vld [vmem:[#allocation0] sm:$0x3]  }
  0x3e   :  { %220 = vrot.lane.b32.xlu0 %v219_v27, %s731_s4  ;;  %v435_v54 = vld [vmem:[#allocation0] sm:$0x3]  }
  0x3f   :  { %228 = vrot.lane.b32.xlu1 %v227_v28, %s732_s5  ;;  %v443_v55 = vld [vmem:[#allocation0] sm:$0x3]  }
  0x40   :  { %v451_v56 = vld [vmem:[#allocation0] sm:$0x3]  }
  0x41   :  { %v459_v57 = vld [vmem:[#allocation0] sm:$0x3]  }
  0x42   :  { %236 = vrot.lane.b32.xlu0 %v235_v29, %s733_s6  ;;  %v467_v58 = vld [vmem:[#allocation0] sm:$0x3]  }
  0x43   :  { %244 = vrot.lane.b32.xlu1 %v243_v30, %s734_s7  ;;  %v6_v59 = vld [vmem:[#allocation0] sm:$0x3]  }
  0x44   :  { %8 = vst.msk [vmem:[%s1294_s1] sm:$0x1] %vm7_vm0, %v6_v59   ;;  %515 = vst.msk [vmem:[%s1294_s1 + $0x3f] sm:$0x2] %vm7_vm0, %v6_v59   ;;  %v475_v60 = vld [vmem:[#allocation0] sm:$0x3]  }
  0x45   :  { %v483_v61 = vld [vmem:[#allocation0] sm:$0x3]  }
  0x46   :  { %252 = vrot.lane.b32.xlu0 %v251_v31, %s735_s0  ;;  %s761_s0 = smov 71   ;;  %v491_v0 = vld [vmem:[#allocation0] sm:$0x3]  }
  0x47   :  { %260 = vrot.lane.b32.xlu1 %v259_v32, %s736_s8  ;;  %s762_s8 = smov 70   ;;  %v499_v1 = vld [vmem:[#allocation0] sm:$0x3]  }
  0x48   :  { %v507_v4 = vld [vmem:[#allocation0] sm:$0x3]  }
  0x4a   :  { %268 = vrot.lane.b32.xlu0 %v267_v33, %s737_s9 }
  0x4b   :  { %276 = vrot.lane.b32.xlu1 %v275_v34, %s738_s10 }
  0x4e   :  { %284 = vrot.lane.b32.xlu0 %v283_v35, %s739_s11 }
  0x4f   :  { %292 = vrot.lane.b32.xlu1 %v291_v36, %s740_s12 }
  0x52   :  { %300 = vrot.lane.b32.xlu0 %v299_v37, %s741_s13 }
  0x53   :  { %308 = vrot.lane.b32.xlu1 %v307_v38, %s742_s14 }
  0x56   :  { %316 = vrot.lane.b32.xlu0 %v315_v39, %s743_s15 }
  0x57   :  { %324 = vrot.lane.b32.xlu1 %v323_v40, %s744_s16 }
  0x5a   :  { %332 = vrot.lane.b32.xlu0 %v331_v41, %s745_s17  ;;  %s763_s17 = smov 69  }
  0x5b   :  { %340 = vrot.lane.b32.xlu1 %v339_v42, %s746_s18  ;;  %s764_s18 = smov 68  }
  0x5e   :  { %348 = vrot.lane.b32.xlu0 %v347_v43, %s747_s19 }
  0x5f   :  { %356 = vrot.lane.b32.xlu1 %v355_v44, %s748_s20 }
  0x62   :  { %364 = vrot.lane.b32.xlu0 %v363_v45, %s749_s21 }
  0x63   :  { %372 = vrot.lane.b32.xlu1 %v371_v46, %s750_s22 }
  0x66   :  { %380 = vrot.lane.b32.xlu0 %v379_v47, %s751_s23 }
  0x67   :  { %388 = vrot.lane.b32.xlu1 %v387_v48, %s752_s24 }
  0x6a   :  { %396 = vrot.lane.b32.xlu0 %v395_v49, %s753_s25 }
  0x6b   :  { %404 = vrot.lane.b32.xlu1 %v403_v50, %s754_s26 }
  0x6e   :  { %412 = vrot.lane.b32.xlu0 %v411_v51, %s755_s27  ;;  %s765_s27 = smov 67  }
  0x6f   :  { %420 = vrot.lane.b32.xlu1 %v419_v52, %s756_s28  ;;  %s766_s28 = smov 66  }
  0x72   :  { %428 = vrot.lane.b32.xlu0 %v427_v53, %s757_s29 }
  0x73   :  { %436 = vrot.lane.b32.xlu1 %v435_v54, %s758_s30 }
  0x76   :  { %444 = vrot.lane.b32.xlu0 %v443_v55, %s759_s2 }
  0x77   :  { %452 = vrot.lane.b32.xlu1 %v451_v56, %s760_s3 }
  0x7a   :  { %460 = vrot.lane.b32.xlu0 %v459_v57, %s761_s0  ;;  %s767_s0 = smov 65  }
  0x7b   :  { %468 = vrot.lane.b32.xlu1 %v467_v58, %s762_s8 }
  0x7c   :  { %v13_v62 = vpop.permute.xlu0 %12  }
  0x7d   :  { %v29_v63 = vpop.permute.xlu1 %28   ;;  %516 = vst.msk [vmem:[%s1294_s1 + $0x1] sm:$0x1] %vm7_vm0, %v13_v62   ;;  %517 = vst.msk [vmem:[%s1294_s1 + $0x40] sm:$0x2] %vm7_vm0, %v13_v62  }
  0x7e   :  { %520 = vst.msk [vmem:[%s1294_s1 + $0x3] sm:$0x1] %vm7_vm0, %v29_v63   ;;  %521 = vst.msk [vmem:[%s1294_s1 + $0x42] sm:$0x2] %vm7_vm0, %v29_v63   ;;  %476 = vrot.lane.b32.xlu0 %v475_v60, %s763_s17 }
  0x7f   :  { %484 = vrot.lane.b32.xlu1 %v483_v61, %s764_s18 }
  0x80   :  { %v21_v2 = vpop.permute.xlu0 %20  }
  0x81   :  { %v37_v3 = vpop.permute.xlu1 %36   ;;  %518 = vst.msk [vmem:[%s1294_s1 + $0x2] sm:$0x1] %vm7_vm0, %v21_v2   ;;  %519 = vst.msk [vmem:[%s1294_s1 + $0x41] sm:$0x2] %vm7_vm0, %v21_v2  }
  0x82   :  { %522 = vst.msk [vmem:[%s1294_s1 + $0x4] sm:$0x1] %vm7_vm0, %v37_v3   ;;  %523 = vst.msk [vmem:[%s1294_s1 + $0x43] sm:$0x2] %vm7_vm0, %v37_v3   ;;  %492 = vrot.lane.b32.xlu0 %v491_v0, %s765_s27 }
  0x83   :  { %500 = vrot.lane.b32.xlu1 %v499_v1, %s766_s28 }
  0x84   :  { %v45_v5 = vpop.permute.xlu0 %44  }
  0x85   :  { %v53_v6 = vpop.permute.xlu1 %52   ;;  %524 = vst.msk [vmem:[%s1294_s1 + $0x5] sm:$0x1] %vm7_vm0, %v45_v5   ;;  %525 = vst.msk [vmem:[%s1294_s1 + $0x44] sm:$0x2] %vm7_vm0, %v45_v5  }
  0x86   :  { %526 = vst.msk [vmem:[%s1294_s1 + $0x6] sm:$0x1] %vm7_vm0, %v53_v6   ;;  %527 = vst.msk [vmem:[%s1294_s1 + $0x45] sm:$0x2] %vm7_vm0, %v53_v6   ;;  %508 = vrot.lane.b32.xlu0 %v507_v4, %s767_s0 }
  0x88   :  { %v61_v7 = vpop.permute.xlu0 %60  }
  0x89   :  { %v69_v8 = vpop.permute.xlu1 %68   ;;  %528 = vst.msk [vmem:[%s1294_s1 + $0x7] sm:$0x1] %vm7_vm0, %v61_v7   ;;  %529 = vst.msk [vmem:[%s1294_s1 + $0x46] sm:$0x2] %vm7_vm0, %v61_v7  }
  0x8a   :  { %530 = vst.msk [vmem:[%s1294_s1 + $0x8] sm:$0x1] %vm7_vm0, %v69_v8   ;;  %531 = vst.msk [vmem:[%s1294_s1 + $0x47] sm:$0x2] %vm7_vm0, %v69_v8  }
  0x8c   :  { %v77_v9 = vpop.permute.xlu0 %76  }
  0x8d   :  { %v85_v10 = vpop.permute.xlu1 %84   ;;  %532 = vst.msk [vmem:[%s1294_s1 + $0x9] sm:$0x1] %vm7_vm0, %v77_v9   ;;  %533 = vst.msk [vmem:[%s1294_s1 + $0x48] sm:$0x2] %vm7_vm0, %v77_v9  }
  0x8e   :  { %534 = vst.msk [vmem:[%s1294_s1 + $0xa] sm:$0x1] %vm7_vm0, %v85_v10   ;;  %535 = vst.msk [vmem:[%s1294_s1 + $0x49] sm:$0x2] %vm7_vm0, %v85_v10  }
  0x90   :  { %v93_v11 = vpop.permute.xlu0 %92  }
  0x91   :  { %v101_v12 = vpop.permute.xlu1 %100   ;;  %536 = vst.msk [vmem:[%s1294_s1 + $0xb] sm:$0x1] %vm7_vm0, %v93_v11   ;;  %537 = vst.msk [vmem:[%s1294_s1 + $0x4a] sm:$0x2] %vm7_vm0, %v93_v11  }
  0x92   :  { %538 = vst.msk [vmem:[%s1294_s1 + $0xc] sm:$0x1] %vm7_vm0, %v101_v12   ;;  %539 = vst.msk [vmem:[%s1294_s1 + $0x4b] sm:$0x2] %vm7_vm0, %v101_v12  }
  0x94   :  { %v109_v13 = vpop.permute.xlu0 %108  }
  0x95   :  { %v117_v14 = vpop.permute.xlu1 %116   ;;  %540 = vst.msk [vmem:[%s1294_s1 + $0xd] sm:$0x1] %vm7_vm0, %v109_v13   ;;  %541 = vst.msk [vmem:[%s1294_s1 + $0x4c] sm:$0x2] %vm7_vm0, %v109_v13  }
  0x96   :  { %542 = vst.msk [vmem:[%s1294_s1 + $0xe] sm:$0x1] %vm7_vm0, %v117_v14   ;;  %543 = vst.msk [vmem:[%s1294_s1 + $0x4d] sm:$0x2] %vm7_vm0, %v117_v14  }
  0x98   :  { %v125_v15 = vpop.permute.xlu0 %124  }
  0x99   :  { %v133_v16 = vpop.permute.xlu1 %132   ;;  %544 = vst.msk [vmem:[%s1294_s1 + $0xf] sm:$0x1] %vm7_vm0, %v125_v15   ;;  %545 = vst.msk [vmem:[%s1294_s1 + $0x4e] sm:$0x2] %vm7_vm0, %v125_v15  }
  0x9a   :  { %546 = vst.msk [vmem:[%s1294_s1 + $0x10] sm:$0x1] %vm7_vm0, %v133_v16   ;;  %547 = vst.msk [vmem:[%s1294_s1 + $0x4f] sm:$0x2] %vm7_vm0, %v133_v16  }
  0x9c   :  { %v141_v17 = vpop.permute.xlu0 %140  }
  0x9d   :  { %v149_v18 = vpop.permute.xlu1 %148   ;;  %548 = vst.msk [vmem:[%s1294_s1 + $0x11] sm:$0x1] %vm7_vm0, %v141_v17   ;;  %549 = vst.msk [vmem:[%s1294_s1 + $0x50] sm:$0x2] %vm7_vm0, %v141_v17  }
  0x9e   :  { %550 = vst.msk [vmem:[%s1294_s1 + $0x12] sm:$0x1] %vm7_vm0, %v149_v18   ;;  %551 = vst.msk [vmem:[%s1294_s1 + $0x51] sm:$0x2] %vm7_vm0, %v149_v18  }
  0xa0   :  { %v157_v19 = vpop.permute.xlu0 %156  }
  0xa1   :  { %v165_v20 = vpop.permute.xlu1 %164   ;;  %552 = vst.msk [vmem:[%s1294_s1 + $0x13] sm:$0x1] %vm7_vm0, %v157_v19   ;;  %553 = vst.msk [vmem:[%s1294_s1 + $0x52] sm:$0x2] %vm7_vm0, %v157_v19  }
  0xa2   :  { %554 = vst.msk [vmem:[%s1294_s1 + $0x14] sm:$0x1] %vm7_vm0, %v165_v20   ;;  %555 = vst.msk [vmem:[%s1294_s1 + $0x53] sm:$0x2] %vm7_vm0, %v165_v20  }
  0xa4   :  { %v173_v21 = vpop.permute.xlu0 %172  }
  0xa5   :  { %v181_v22 = vpop.permute.xlu1 %180   ;;  %556 = vst.msk [vmem:[%s1294_s1 + $0x15] sm:$0x1] %vm7_vm0, %v173_v21   ;;  %557 = vst.msk [vmem:[%s1294_s1 + $0x54] sm:$0x2] %vm7_vm0, %v173_v21  }
  0xa6   :  { %558 = vst.msk [vmem:[%s1294_s1 + $0x16] sm:$0x1] %vm7_vm0, %v181_v22   ;;  %559 = vst.msk [vmem:[%s1294_s1 + $0x55] sm:$0x2] %vm7_vm0, %v181_v22  }
  0xa8   :  { %v189_v23 = vpop.permute.xlu0 %188  }
  0xa9   :  { %v197_v24 = vpop.permute.xlu1 %196   ;;  %560 = vst.msk [vmem:[%s1294_s1 + $0x17] sm:$0x1] %vm7_vm0, %v189_v23   ;;  %561 = vst.msk [vmem:[%s1294_s1 + $0x56] sm:$0x2] %vm7_vm0, %v189_v23  }
  0xaa   :  { %562 = vst.msk [vmem:[%s1294_s1 + $0x18] sm:$0x1] %vm7_vm0, %v197_v24   ;;  %563 = vst.msk [vmem:[%s1294_s1 + $0x57] sm:$0x2] %vm7_vm0, %v197_v24  }
  0xac   :  { %v205_v25 = vpop.permute.xlu0 %204  }
  0xad   :  { %v213_v26 = vpop.permute.xlu1 %212   ;;  %564 = vst.msk [vmem:[%s1294_s1 + $0x19] sm:$0x1] %vm7_vm0, %v205_v25   ;;  %565 = vst.msk [vmem:[%s1294_s1 + $0x58] sm:$0x2] %vm7_vm0, %v205_v25  }
  0xae   :  { %566 = vst.msk [vmem:[%s1294_s1 + $0x1a] sm:$0x1] %vm7_vm0, %v213_v26   ;;  %567 = vst.msk [vmem:[%s1294_s1 + $0x59] sm:$0x2] %vm7_vm0, %v213_v26  }
  0xb0   :  { %v221_v27 = vpop.permute.xlu0 %220  }
  0xb1   :  { %v229_v28 = vpop.permute.xlu1 %228   ;;  %568 = vst.msk [vmem:[%s1294_s1 + $0x1b] sm:$0x1] %vm7_vm0, %v221_v27   ;;  %569 = vst.msk [vmem:[%s1294_s1 + $0x5a] sm:$0x2] %vm7_vm0, %v221_v27  }
  0xb2   :  { %570 = vst.msk [vmem:[%s1294_s1 + $0x1c] sm:$0x1] %vm7_vm0, %v229_v28   ;;  %571 = vst.msk [vmem:[%s1294_s1 + $0x5b] sm:$0x2] %vm7_vm0, %v229_v28  }
  0xb4   :  { %v237_v29 = vpop.permute.xlu0 %236  }
  0xb5   :  { %v245_v30 = vpop.permute.xlu1 %244   ;;  %572 = vst.msk [vmem:[%s1294_s1 + $0x1d] sm:$0x1] %vm7_vm0, %v237_v29   ;;  %573 = vst.msk [vmem:[%s1294_s1 + $0x5c] sm:$0x2] %vm7_vm0, %v237_v29  }
  0xb6   :  { %574 = vst.msk [vmem:[%s1294_s1 + $0x1e] sm:$0x1] %vm7_vm0, %v245_v30   ;;  %575 = vst.msk [vmem:[%s1294_s1 + $0x5d] sm:$0x2] %vm7_vm0, %v245_v30  }
  0xb8   :  { %v253_v31 = vpop.permute.xlu0 %252  }
  0xb9   :  { %v261_v32 = vpop.permute.xlu1 %260   ;;  %576 = vst.msk [vmem:[%s1294_s1 + $0x1f] sm:$0x1] %vm7_vm0, %v253_v31   ;;  %577 = vst.msk [vmem:[%s1294_s1 + $0x5e] sm:$0x2] %vm7_vm0, %v253_v31  }
  0xba   :  { %578 = vst.msk [vmem:[%s1294_s1 + $0x20] sm:$0x1] %vm7_vm0, %v261_v32   ;;  %579 = vst.msk [vmem:[%s1294_s1 + $0x5f] sm:$0x2] %vm7_vm0, %v261_v32  }
  0xbc   :  { %v269_v33 = vpop.permute.xlu0 %268  }
  0xbd   :  { %v277_v34 = vpop.permute.xlu1 %276   ;;  %580 = vst.msk [vmem:[%s1294_s1 + $0x21] sm:$0x1] %vm7_vm0, %v269_v33   ;;  %581 = vst.msk [vmem:[%s1294_s1 + $0x60] sm:$0x2] %vm7_vm0, %v269_v33  }
  0xbe   :  { %582 = vst.msk [vmem:[%s1294_s1 + $0x22] sm:$0x1] %vm7_vm0, %v277_v34   ;;  %583 = vst.msk [vmem:[%s1294_s1 + $0x61] sm:$0x2] %vm7_vm0, %v277_v34  }
  0xc0   :  { %v285_v35 = vpop.permute.xlu0 %284  }
  0xc1   :  { %v293_v36 = vpop.permute.xlu1 %292   ;;  %584 = vst.msk [vmem:[%s1294_s1 + $0x23] sm:$0x1] %vm7_vm0, %v285_v35   ;;  %585 = vst.msk [vmem:[%s1294_s1 + $0x62] sm:$0x2] %vm7_vm0, %v285_v35  }
  0xc2   :  { %586 = vst.msk [vmem:[%s1294_s1 + $0x24] sm:$0x1] %vm7_vm0, %v293_v36   ;;  %587 = vst.msk [vmem:[%s1294_s1 + $0x63] sm:$0x2] %vm7_vm0, %v293_v36  }
  0xc4   :  { %v301_v37 = vpop.permute.xlu0 %300  }
  0xc5   :  { %v309_v38 = vpop.permute.xlu1 %308   ;;  %588 = vst.msk [vmem:[%s1294_s1 + $0x25] sm:$0x1] %vm7_vm0, %v301_v37   ;;  %589 = vst.msk [vmem:[%s1294_s1 + $0x64] sm:$0x2] %vm7_vm0, %v301_v37  }
  0xc6   :  { %590 = vst.msk [vmem:[%s1294_s1 + $0x26] sm:$0x1] %vm7_vm0, %v309_v38   ;;  %591 = vst.msk [vmem:[%s1294_s1 + $0x65] sm:$0x2] %vm7_vm0, %v309_v38  }
  0xc8   :  { %v317_v39 = vpop.permute.xlu0 %316  }
  0xc9   :  { %v325_v40 = vpop.permute.xlu1 %324   ;;  %592 = vst.msk [vmem:[%s1294_s1 + $0x27] sm:$0x1] %vm7_vm0, %v317_v39   ;;  %593 = vst.msk [vmem:[%s1294_s1 + $0x66] sm:$0x2] %vm7_vm0, %v317_v39  }
  0xca   :  { %594 = vst.msk [vmem:[%s1294_s1 + $0x28] sm:$0x1] %vm7_vm0, %v325_v40   ;;  %595 = vst.msk [vmem:[%s1294_s1 + $0x67] sm:$0x2] %vm7_vm0, %v325_v40  }
  0xcc   :  { %v333_v41 = vpop.permute.xlu0 %332  }
  0xcd   :  { %v341_v42 = vpop.permute.xlu1 %340   ;;  %596 = vst.msk [vmem:[%s1294_s1 + $0x29] sm:$0x1] %vm7_vm0, %v333_v41   ;;  %597 = vst.msk [vmem:[%s1294_s1 + $0x68] sm:$0x2] %vm7_vm0, %v333_v41  }
  0xce   :  { %598 = vst.msk [vmem:[%s1294_s1 + $0x2a] sm:$0x1] %vm7_vm0, %v341_v42   ;;  %599 = vst.msk [vmem:[%s1294_s1 + $0x69] sm:$0x2] %vm7_vm0, %v341_v42  }
  0xd0   :  { %v349_v43 = vpop.permute.xlu0 %348  }
  0xd1   :  { %v357_v44 = vpop.permute.xlu1 %356   ;;  %600 = vst.msk [vmem:[%s1294_s1 + $0x2b] sm:$0x1] %vm7_vm0, %v349_v43   ;;  %601 = vst.msk [vmem:[%s1294_s1 + $0x6a] sm:$0x2] %vm7_vm0, %v349_v43  }
  0xd2   :  { %602 = vst.msk [vmem:[%s1294_s1 + $0x2c] sm:$0x1] %vm7_vm0, %v357_v44   ;;  %603 = vst.msk [vmem:[%s1294_s1 + $0x6b] sm:$0x2] %vm7_vm0, %v357_v44  }
  0xd4   :  { %v365_v45 = vpop.permute.xlu0 %364  }
  0xd5   :  { %v373_v46 = vpop.permute.xlu1 %372   ;;  %604 = vst.msk [vmem:[%s1294_s1 + $0x2d] sm:$0x1] %vm7_vm0, %v365_v45   ;;  %605 = vst.msk [vmem:[%s1294_s1 + $0x6c] sm:$0x2] %vm7_vm0, %v365_v45  }
  0xd6   :  { %606 = vst.msk [vmem:[%s1294_s1 + $0x2e] sm:$0x1] %vm7_vm0, %v373_v46   ;;  %607 = vst.msk [vmem:[%s1294_s1 + $0x6d] sm:$0x2] %vm7_vm0, %v373_v46  }
  0xd8   :  { %v381_v47 = vpop.permute.xlu0 %380  }
  0xd9   :  { %v389_v48 = vpop.permute.xlu1 %388   ;;  %608 = vst.msk [vmem:[%s1294_s1 + $0x2f] sm:$0x1] %vm7_vm0, %v381_v47   ;;  %609 = vst.msk [vmem:[%s1294_s1 + $0x6e] sm:$0x2] %vm7_vm0, %v381_v47  }
  0xda   :  { %610 = vst.msk [vmem:[%s1294_s1 + $0x30] sm:$0x1] %vm7_vm0, %v389_v48   ;;  %611 = vst.msk [vmem:[%s1294_s1 + $0x6f] sm:$0x2] %vm7_vm0, %v389_v48  }
  0xdc   :  { %v397_v49 = vpop.permute.xlu0 %396  }
  0xdd   :  { %v405_v50 = vpop.permute.xlu1 %404   ;;  %612 = vst.msk [vmem:[%s1294_s1 + $0x31] sm:$0x1] %vm7_vm0, %v397_v49   ;;  %613 = vst.msk [vmem:[%s1294_s1 + $0x70] sm:$0x2] %vm7_vm0, %v397_v49  }
  0xde   :  { %614 = vst.msk [vmem:[%s1294_s1 + $0x32] sm:$0x1] %vm7_vm0, %v405_v50   ;;  %615 = vst.msk [vmem:[%s1294_s1 + $0x71] sm:$0x2] %vm7_vm0, %v405_v50  }
  0xe0   :  { %v413_v51 = vpop.permute.xlu0 %412  }
  0xe1   :  { %v421_v52 = vpop.permute.xlu1 %420   ;;  %616 = vst.msk [vmem:[%s1294_s1 + $0x33] sm:$0x1] %vm7_vm0, %v413_v51   ;;  %617 = vst.msk [vmem:[%s1294_s1 + $0x72] sm:$0x2] %vm7_vm0, %v413_v51  }
  0xe2   :  { %618 = vst.msk [vmem:[%s1294_s1 + $0x34] sm:$0x1] %vm7_vm0, %v421_v52   ;;  %619 = vst.msk [vmem:[%s1294_s1 + $0x73] sm:$0x2] %vm7_vm0, %v421_v52  }
  0xe4   :  { %v429_v53 = vpop.permute.xlu0 %428  }
  0xe5   :  { %v437_v54 = vpop.permute.xlu1 %436   ;;  %620 = vst.msk [vmem:[%s1294_s1 + $0x35] sm:$0x1] %vm7_vm0, %v429_v53   ;;  %621 = vst.msk [vmem:[%s1294_s1 + $0x74] sm:$0x2] %vm7_vm0, %v429_v53  }
  0xe6   :  { %622 = vst.msk [vmem:[%s1294_s1 + $0x36] sm:$0x1] %vm7_vm0, %v437_v54   ;;  %623 = vst.msk [vmem:[%s1294_s1 + $0x75] sm:$0x2] %vm7_vm0, %v437_v54  }
  0xe8   :  { %v445_v55 = vpop.permute.xlu0 %444  }
  0xe9   :  { %v453_v56 = vpop.permute.xlu1 %452   ;;  %624 = vst.msk [vmem:[%s1294_s1 + $0x37] sm:$0x1] %vm7_vm0, %v445_v55   ;;  %625 = vst.msk [vmem:[%s1294_s1 + $0x76] sm:$0x2] %vm7_vm0, %v445_v55  }
  0xea   :  { %626 = vst.msk [vmem:[%s1294_s1 + $0x38] sm:$0x1] %vm7_vm0, %v453_v56   ;;  %627 = vst.msk [vmem:[%s1294_s1 + $0x77] sm:$0x2] %vm7_vm0, %v453_v56  }
  0xec   :  { %v461_v57 = vpop.permute.xlu0 %460  }
  0xed   :  { %v469_v58 = vpop.permute.xlu1 %468   ;;  %628 = vst.msk [vmem:[%s1294_s1 + $0x39] sm:$0x1] %vm7_vm0, %v461_v57   ;;  %629 = vst.msk [vmem:[%s1294_s1 + $0x78] sm:$0x2] %vm7_vm0, %v461_v57  }
  0xee   :  { %630 = vst.msk [vmem:[%s1294_s1 + $0x3a] sm:$0x1] %vm7_vm0, %v469_v58   ;;  %631 = vst.msk [vmem:[%s1294_s1 + $0x79] sm:$0x2] %vm7_vm0, %v469_v58  }
  0xf0   :  { %v477_v59 = vpop.permute.xlu0 %476  }
  0xf1   :  { %v485_v60 = vpop.permute.xlu1 %484   ;;  %632 = vst.msk [vmem:[%s1294_s1 + $0x3b] sm:$0x1] %vm7_vm0, %v477_v59   ;;  %633 = vst.msk [vmem:[%s1294_s1 + $0x7a] sm:$0x2] %vm7_vm0, %v477_v59  }
  0xf2   :  { %634 = vst.msk [vmem:[%s1294_s1 + $0x3c] sm:$0x1] %vm7_vm0, %v485_v60   ;;  %635 = vst.msk [vmem:[%s1294_s1 + $0x7b] sm:$0x2] %vm7_vm0, %v485_v60  }
  0xf4   :  { %v493_v61 = vpop.permute.xlu0 %492  }
  0xf5   :  { %v501_v62 = vpop.permute.xlu1 %500   ;;  %636 = vst.msk [vmem:[%s1294_s1 + $0x3d] sm:$0x1] %vm7_vm0, %v493_v61   ;;  %637 = vst.msk [vmem:[%s1294_s1 + $0x7c] sm:$0x2] %vm7_vm0, %v493_v61  }
  0xf6   :  { %638 = vst.msk [vmem:[%s1294_s1 + $0x3e] sm:$0x1] %vm7_vm0, %v501_v62   ;;  %639 = vst.msk [vmem:[%s1294_s1 + $0x7d] sm:$0x2] %vm7_vm0, %v501_v62  }
  0xf8   :  { %v509_v63 = vpop.permute.xlu0 %508  }
  0xf9   :  { %640 = vst.msk [vmem:[%s1294_s1 + $0x3f] sm:$0x1] %vm7_vm0, %v509_v63   ;;  %641 = vst.msk [vmem:[%s1294_s1 + $0x7e] sm:$0x2] %vm7_vm0, %v509_v63  }

// kernel: cross_attention_with_forget_gate.1
= control target key start
LH: loop header
LB: loop body
LE: loop exit
PB: predicated region body
PF: predicated region fallthrough
CT: control target
= control target key end

     0   :  { %v2852_v2 = vmov 0   ;;  %s3818_s0 = inlined_call_operand.vmem [shape: bf16[256,256], index: 0, kind: input, shape index: {}]   ;;  %s3819_s1 = inlined_call_operand.vmem [shape: bf16[128,256], index: 1, kind: input, shape index: {}]   ;;  %s3820_s2 = inlined_call_operand.vmem [shape: f32[128,1], index: 2, kind: input, shape index: {}]   ;;  %s3821_s3 = inlined_call_operand.vmem [shape: bf16[128,128], index: 3, kind: input, shape index: {}]   ;;  %s3822_s4 = inlined_call_operand.vmem [shape: f32[1,128], index: 4, kind: input, shape index: {}]   ;;  %s3823_s5 = inlined_call_operand.vmem [shape: bf16[128,256], index: 5, kind: input, shape index: {}]   ;;  %s3824_s6 = inlined_call_operand.vmem [shape: f32[1,256], index: 6, kind: input, shape index: {}]   ;;  %s3825_s7 = inlined_call_operand.vmem [shape: bf16[128,128], index: 7, kind: input, shape index: {}]   ;;  %s3826_s8 = inlined_call_operand.vmem [shape: f32[1,128], index: 8, kind: input, shape index: {}]   ;;  %s3827_s9 = inlined_call_operand.vmem [shape: bf16[256,128], index: 9, kind: input, shape index: {}]   ;;  %s3828_s10 = inlined_call_operand.vmem [shape: f32[256,1], index: 10, kind: input, shape index: {}]   ;;  %s3829_s11 = inlined_call_operand.vmem [shape: f32[128,128], index: 11, kind: input, shape index: {}]   ;;  %s3830_s12 = inlined_call_operand.hbm [shape: f32[256,128], index: 12, kind: output, shape index: {}]  }
   0x1   :  { %v2572_v0 = vld [vmem:[%s3818_s0 + $0x4] ss:$8 sps:$4 sm:$0xff]   ;;  %v2574_v1 = vld [vmem:[%s3818_s0] ss:$8 sps:$4 sm:$0xff]   ;;  %2570 = vset.pattern.permute.xlu0 %v2852_v2  ;;  %2571 = vset.pattern.permute.xlu1 %v2852_v2  ;;  %v2575_v3 = vld [vmem:[%s3818_s0 + $0x14] ss:$8 sps:$4 sm:$0xff]  }
   0x2   :  { %427 = vmatprep.subr.bf16.mxu0 %v2572_v0  ;;  %v2577_v4 = vld [vmem:[%s3818_s0 + $0x10] ss:$8 sps:$4 sm:$0xff]   ;;  %v2578_v5 = vld [vmem:[%s3818_s0 + $0x24] ss:$8 sps:$4 sm:$0xff]   ;;  %v2580_v6 = vld [vmem:[%s3818_s0 + $0x20] ss:$8 sps:$4 sm:$0xff]  }
   0x3   :  { %428 = vmatpush1.bf16.msra.mxu0 %v2574_v1  ;;  %v2581_v7 = vld [vmem:[%s3818_s0 + $0x34] ss:$8 sps:$4 sm:$0xff]   ;;  %v2583_v8 = vld [vmem:[%s3818_s0 + $0x30] ss:$8 sps:$4 sm:$0xff]   ;;  %v2584_v9 = vld [vmem:[%s3818_s0 + $0x44] ss:$8 sps:$4 sm:$0xff]  }
   0x4   :  { %429 = vmatprep.subr.bf16.mxu0 %v2575_v3  ;;  %v2586_v10 = vld [vmem:[%s3818_s0 + $0x40] ss:$8 sps:$4 sm:$0xff]   ;;  %v2587_v11 = vld [vmem:[%s3818_s0 + $0x54] ss:$8 sps:$4 sm:$0xff]   ;;  %v2589_v12 = vld [vmem:[%s3818_s0 + $0x50] ss:$8 sps:$4 sm:$0xff]  }
   0x5   :  { %v2590_v13 = vld [vmem:[%s3818_s0 + $0x64] ss:$8 sps:$4 sm:$0xff]   ;;  %v2592_v15 = vld [vmem:[%s3818_s0 + $0x60] ss:$8 sps:$4 sm:$0xff]   ;;  %v2593_v16 = vld [vmem:[%s3818_s0 + $0x74] ss:$8 sps:$4 sm:$0xff]  }
   0x6   :  { %v2622_v14 = vld [vmem:[%s3819_s1 + $0x4] ss:$8 sps:$4 sm:$0xff]   ;;  %v2595_v17 = vld [vmem:[%s3818_s0 + $0x70] ss:$8 sps:$4 sm:$0xff]   ;;  %v2598_v19 = vld [vmem:[%s3818_s0 + $0x80] ss:$8 sps:$4 sm:$0xff]  }
   0x7   :  { %430 = vmatpush1.bf16.msra.mxu0 %v2577_v4  ;;  %459 = vmatprep.mubr.bf16.mxu0 %v2622_v14  ;;  %v2596_v18 = vld [vmem:[%s3818_s0 + $0x84] ss:$8 sps:$4 sm:$0xff]   ;;  %v2599_v20 = vld [vmem:[%s3818_s0 + $0x94] ss:$8 sps:$4 sm:$0xff]   ;;  %v2601_v25 = vld [vmem:[%s3818_s0 + $0x90] ss:$8 sps:$4 sm:$0xff]  }
   0x8   :  { %431 = vmatprep.subr.bf16.mxu0 %v2578_v5  ;;  %v91_v21 = vld [vmem:[%s3820_s2] sm:$0xff]  ;;  %v93_v22 = vld [vmem:[%s3820_s2 + $0x10] sm:$0xff]  ;;  %v92_v23 = vld [vmem:[%s3820_s2 + $0x8] sm:$0xff] }
   0x9   :  { %109 = vperm.xlu0 %2570, %v91_v21   ;;  %119 = vperm.xlu1 %2571, %v93_v22   ;;  %v94_v24 = vld [vmem:[%s3820_s2 + $0x18] sm:$0xff]  ;;  %v2602_v26 = vld [vmem:[%s3818_s0 + $0xa4] ss:$8 sps:$4 sm:$0xff]   ;;  %v2604_v28 = vld [vmem:[%s3818_s0 + $0xa0] ss:$8 sps:$4 sm:$0xff]  }
   0xa   :  { %v95_v27 = vld [vmem:[%s3820_s2 + $0x20] sm:$0xff]  ;;  %v96_v29 = vld [vmem:[%s3820_s2 + $0x28] sm:$0xff]  ;;  %v2605_v30 = vld [vmem:[%s3818_s0 + $0xb4] ss:$8 sps:$4 sm:$0xff]  }
   0xb   :  { %432 = vmatpush1.bf16.msra.mxu0 %v2580_v6  ;;  %v2644_v31 = vld [vmem:[%s3821_s3] sm:$0xff]   ;;  %v2645_v32 = vld [vmem:[%s3821_s3 + $0x8] sm:$0xff]   ;;  %v97_v33 = vld [vmem:[%s3820_s2 + $0x30] sm:$0xff] }
   0xc   :  { %433 = vmatprep.subr.bf16.mxu0 %v2581_v7  ;;  %2374 = vmatprep.subr.bf16.mxu1 %v2644_v31  ;;  %v2607_v34 = vld [vmem:[%s3818_s0 + $0xb0] ss:$8 sps:$4 sm:$0xff]   ;;  %v2608_v36 = vld [vmem:[%s3818_s0 + $0xc4] ss:$8 sps:$4 sm:$0xff]   ;;  %v2610_v40 = vld [vmem:[%s3818_s0 + $0xc0] ss:$8 sps:$4 sm:$0xff]  }
   0xd   :  { %114 = vperm.xlu0 %2570, %v92_v23   ;;  %124 = vperm.xlu1 %2571, %v94_v24   ;;  %v98_v35 = vld [vmem:[%s3820_s2 + $0x38] sm:$0xff]  ;;  %v2646_v37 = vld [vmem:[%s3821_s3 + $0x10] sm:$0xff]   ;;  %v99_v38 = vld [vmem:[%s3820_s2 + $0x40] sm:$0xff] }
   0xe   :  { %2375 = vmatpush3.bf16.msra.mxu1 %v2644_v31  ;;  %v100_v39 = vld [vmem:[%s3820_s2 + $0x48] sm:$0xff]  ;;  %v2647_v41 = vld [vmem:[%s3821_s3 + $0x18] sm:$0xff]   ;;  %v101_v43 = vld [vmem:[%s3820_s2 + $0x50] sm:$0xff] }
   0xf   :  { %434 = vmatpush1.bf16.msra.mxu0 %v2583_v8  ;;  %2376 = vmatprep.subr.bf16.mxu1 %v2645_v32  ;;  %v2611_v42 = vld [vmem:[%s3818_s0 + $0xd4] ss:$8 sps:$4 sm:$0xff]   ;;  %v2613_v45 = vld [vmem:[%s3818_s0 + $0xd0] ss:$8 sps:$4 sm:$0xff]   ;;  %v2648_v46 = vld [vmem:[%s3821_s3 + $0x20] sm:$0xff]  }
  0x10   :  { %435 = vmatprep.subr.bf16.mxu0 %v2584_v9  ;;  %v102_v44 = vld [vmem:[%s3820_s2 + $0x58] sm:$0xff]  ;;  %v2614_v47 = vld [vmem:[%s3818_s0 + $0xe4] ss:$8 sps:$4 sm:$0xff]   ;;  %v2616_v50 = vld [vmem:[%s3818_s0 + $0xe0] ss:$8 sps:$4 sm:$0xff]  }
  0x11   :  { %129 = vperm.xlu0 %2570, %v95_v27   ;;  %134 = vperm.xlu1 %2571, %v96_v29   ;;  %v103_v48 = vld [vmem:[%s3820_s2 + $0x60] sm:$0xff]  ;;  %v104_v49 = vld [vmem:[%s3820_s2 + $0x68] sm:$0xff]  ;;  %v2617_v51 = vld [vmem:[%s3818_s0 + $0xf4] ss:$8 sps:$4 sm:$0xff]  }
  0x12   :  { %2377 = vmatpush3.bf16.msra.mxu1 %v2645_v32  ;;  %v105_v52 = vld [vmem:[%s3820_s2 + $0x70] sm:$0xff]  ;;  %v106_v53 = vld [vmem:[%s3820_s2 + $0x78] sm:$0xff]  ;;  %v2620_v55 = vld [vmem:[%s3819_s1] ss:$8 sps:$4 sm:$0xff]  }
  0x13   :  { %436 = vmatpush1.bf16.msra.mxu0 %v2586_v10  ;;  %2378 = vmatprep.subr.bf16.mxu1 %v2646_v37  ;;  %v2619_v54 = vld [vmem:[%s3818_s0 + $0xf0] ss:$8 sps:$4 sm:$0xff]   ;;  %v2623_v56 = vld [vmem:[%s3819_s1 + $0x14] ss:$8 sps:$4 sm:$0xff]  }
  0x14   :  { %437 = vmatprep.subr.bf16.mxu0 %v2587_v11 }
  0x15   :  { %139 = vperm.xlu0 %2570, %v97_v33   ;;  %144 = vperm.xlu1 %2571, %v98_v35  }
  0x16   :  { %2379 = vmatpush3.bf16.msra.mxu1 %v2646_v37 }
  0x17   :  { %438 = vmatpush1.bf16.msra.mxu0 %v2589_v12  ;;  %2380 = vmatprep.subr.bf16.mxu1 %v2647_v41 }
  0x18   :  { %439 = vmatprep.subr.bf16.mxu0 %v2590_v13 }
  0x19   :  { %149 = vperm.xlu0 %2570, %v99_v38   ;;  %154 = vperm.xlu1 %2571, %v100_v39  }
  0x1a   :  { %2381 = vmatpush3.bf16.msra.mxu1 %v2647_v41 }
  0x1b   :  { %440 = vmatpush1.bf16.msra.mxu0 %v2592_v15  ;;  %2382 = vmatprep.subr.bf16.mxu1 %v2648_v46 }
  0x1c   :  { %441 = vmatprep.subr.bf16.mxu0 %v2593_v16 }
  0x1d   :  { %159 = vperm.xlu0 %2570, %v101_v43   ;;  %164 = vperm.xlu1 %2571, %v102_v44  }
  0x1e   :  { %2383 = vmatpush3.bf16.msra.mxu1 %v2648_v46 }
  0x1f   :  { %442 = vmatpush1.bf16.msra.mxu0 %v2595_v17 }
  0x20   :  { %443 = vmatprep.subr.bf16.mxu0 %v2596_v18 }
  0x21   :  { %169 = vperm.xlu0 %2570, %v103_v48   ;;  %174 = vperm.xlu1 %2571, %v104_v49  }
  0x23   :  { %444 = vmatpush1.bf16.msra.mxu0 %v2598_v19 }
  0x24   :  { %445 = vmatprep.subr.bf16.mxu0 %v2599_v20 }
  0x25   :  { %179 = vperm.xlu0 %2570, %v105_v52   ;;  %184 = vperm.xlu1 %2571, %v106_v53  }
  0x27   :  { %446 = vmatpush1.bf16.msra.mxu0 %v2601_v25 }
  0x28   :  { %447 = vmatprep.subr.bf16.mxu0 %v2602_v26 }
  0x2b   :  { %448 = vmatpush1.bf16.msra.mxu0 %v2604_v28 }
  0x2c   :  { %449 = vmatprep.subr.bf16.mxu0 %v2605_v30 }
  0x2f   :  { %450 = vmatpush1.bf16.msra.mxu0 %v2607_v34 }
  0x30   :  { %451 = vmatprep.subr.bf16.mxu0 %v2608_v36 }
  0x33   :  { %452 = vmatpush1.bf16.msra.mxu0 %v2610_v40 }
  0x34   :  { %453 = vmatprep.subr.bf16.mxu0 %v2611_v42 }
  0x37   :  { %454 = vmatpush1.bf16.msra.mxu0 %v2613_v45 }
  0x38   :  { %455 = vmatprep.subr.bf16.mxu0 %v2614_v47 }
  0x3b   :  { %456 = vmatpush1.bf16.msra.mxu0 %v2616_v50 }
  0x3c   :  { %457 = vmatprep.subr.bf16.mxu0 %v2617_v51 }
  0x3f   :  { %458 = vmatpush1.bf16.msra.mxu0 %v2619_v54 }
  0x40   :  { %17 = vsyncpa [#allocation3], 0  ;;  %v2625_v57 = vld [vmem:[%s3819_s1 + $0x10] ss:$8 sps:$4 sm:$0xff]   ;;  %v2626_v58 = vld [vmem:[%s3819_s1 + $0x24] ss:$8 sps:$4 sm:$0xff]  }
  0x41   :  { %v2628_v59 = vld [vmem:[%s3819_s1 + $0x20] ss:$8 sps:$4 sm:$0xff]   ;;  %v2629_v60 = vld [vmem:[%s3819_s1 + $0x34] ss:$8 sps:$4 sm:$0xff]   ;;  %v2631_v61 = vld [vmem:[%s3819_s1 + $0x30] ss:$8 sps:$4 sm:$0xff]  }
  0x42   :  { %460 = vmatmul.mubr.bf16.vlgmr.msra.gmra.mrb[0].mxu0 %v2620_v55  ;;  %v2632_v62 = vld [vmem:[%s3819_s1 + $0x44] ss:$8 sps:$4 sm:$0xff]   ;;  %v2634_v63 = vld [vmem:[%s3819_s1 + $0x40] ss:$8 sps:$4 sm:$0xff]   ;;  %v2635_v0 = vld [vmem:[%s3819_s1 + $0x54] ss:$8 sps:$4 sm:$0xff]  }
  0x43   :  { %469 = vmatprep.mubr.bf16.mxu0 %v2623_v56  ;;  %v2637_v1 = vld [vmem:[%s3819_s1 + $0x50] ss:$8 sps:$4 sm:$0xff]   ;;  %v2638_v3 = vld [vmem:[%s3819_s1 + $0x64] ss:$8 sps:$4 sm:$0xff]   ;;  %v2640_v4 = vld [vmem:[%s3819_s1 + $0x60] ss:$8 sps:$4 sm:$0xff]  }
  0x44   :  { %v2641_v5 = vld [vmem:[%s3819_s1 + $0x74] ss:$8 sps:$4 sm:$0xff]   ;;  %v2643_v6 = vld [vmem:[%s3819_s1 + $0x70] ss:$8 sps:$4 sm:$0xff]   ;;  %v2649_v7 = vld [vmem:[%s3821_s3 + $0x28] sm:$0xff]  }
  0x45   :  { %2384 = vmatprep.subr.bf16.mxu1 %v2649_v7  ;;  %v2650_v8 = vld [vmem:[%s3821_s3 + $0x30] sm:$0xff]   ;;  %v2651_v9 = vld [vmem:[%s3821_s3 + $0x38] sm:$0xff]   ;;  %v2654_v10 = vld [vmem:[%s3823_s5 + $0x4] ss:$8 sps:$4 sm:$0xff]  }
  0x46   :  { %2385 = vmatpush3.bf16.msra.mxu1 %v2649_v7  ;;  %v2652_v30 = vld [vmem:[%s3823_s5] ss:$8 sps:$4 sm:$0xff]   ;;  %v2657_v32 = vld [vmem:[%s3823_s5 + $0x14] ss:$8 sps:$4 sm:$0xff]   ;;  %v2655_v34 = vld [vmem:[%s3823_s5 + $0x10] ss:$8 sps:$4 sm:$0xff]  }
  0x47   :  { %2386 = vmatprep.subr.bf16.mxu1 %v2650_v8  ;;  %v2660_v37 = vld [vmem:[%s3823_s5 + $0x24] ss:$8 sps:$4 sm:$0xff]   ;;  %v2658_v45 = vld [vmem:[%s3823_s5 + $0x20] ss:$8 sps:$4 sm:$0xff]   ;;  %v2663_v47 = vld [vmem:[%s3823_s5 + $0x34] ss:$8 sps:$4 sm:$0xff]  }
  0x48   :  { %v2661_v49 = vld [vmem:[%s3823_s5 + $0x30] ss:$8 sps:$4 sm:$0xff]   ;;  %v2666_v52 = vld [vmem:[%s3823_s5 + $0x44] ss:$8 sps:$4 sm:$0xff]  }
  0x4a   :  { %470 = vmatmul.mubr.bf16.gmra.mrb[4].mxu0 %v2625_v57  ;;  %2387 = vmatpush3.bf16.msra.mxu1 %v2650_v8 }
  0x4b   :  { %479 = vmatprep.mubr.bf16.mxu0 %v2626_v58  ;;  %2388 = vmatprep.subr.bf16.mxu1 %v2651_v9 }
  0x4e   :  { %2389 = vmatpush3.bf16.msra.mxu1 %v2651_v9 }
  0x4f   :  { %832 = vmatprep.subr.bf16.mxu1 %v2654_v10 }
  0x52   :  { %480 = vmatmul.mubr.bf16.gmra.mrb[8].mxu0 %v2628_v59 }
  0x53   :  { %489 = vmatprep.mubr.bf16.mxu0 %v2629_v60  ;;  %v2664_v60 = vld [vmem:[%s3823_s5 + $0x40] ss:$8 sps:$4 sm:$0xff]  }
  0x5a   :  { %490 = vmatmul.mubr.bf16.gmra.mrb[12].mxu0 %v2631_v61 }
  0x5b   :  { %499 = vmatprep.mubr.bf16.mxu0 %v2632_v62  ;;  %v2669_v62 = vld [vmem:[%s3823_s5 + $0x54] ss:$8 sps:$4 sm:$0xff]  }
  0x62   :  { %500 = vmatmul.mubr.bf16.gmra.mrb[16].mxu0 %v2634_v63 }
  0x63   :  { %509 = vmatprep.mubr.bf16.mxu0 %v2635_v0  ;;  %v2667_v0 = vld [vmem:[%s3823_s5 + $0x50] ss:$8 sps:$4 sm:$0xff]  }
  0x6a   :  { %510 = vmatmul.mubr.bf16.gmra.mrb[20].mxu0 %v2637_v1 }
  0x6b   :  { %519 = vmatprep.mubr.bf16.mxu0 %v2638_v3 }
  0x72   :  { %520 = vmatmul.mubr.bf16.gmra.mrb[24].mxu0 %v2640_v4  ;;  %v2672_v4 = vld [vmem:[%s3823_s5 + $0x64] ss:$8 sps:$4 sm:$0xff]  }
  0x73   :  { %529 = vmatprep.mubr.bf16.mxu0 %v2641_v5 }
  0x7a   :  { %530 = vmatmul.mubr.bf16.gmra.mrb[28].mxu0 %v2643_v6 }
  0x88   :  { %v3142_v11 = vpop.permute.xlu0 %109  ;;  %v3147_v19 = vpop.permute.xlu1 %119 }
  0x8c   :  { %v115_v13 = vpop.permute.xlu0 %114  ;;  %v125_v24 = vpop.permute.xlu1 %124 }
  0x90   :  { %v130_v35 = vpop.permute.xlu0 %129  ;;  %v135_v38 = vpop.permute.xlu1 %134 }
  0x94   :  { %v140_v50 = vpop.permute.xlu0 %139  ;;  %v145_v53 = vpop.permute.xlu1 %144 }
  0x98   :  { %v150_v1 = vpop.permute.xlu0 %149  ;;  %v155_v5 = vpop.permute.xlu1 %154 }
 0x115   :  { %v461_v12 = vpop.f32.mrb[0].mxu0 }
 0x116   :  { %v3144_v14 = vpop.f32.mrb[1].mxu0  ;;  %v462_v16 = vadd.f32 %v461_v12, %v3142_v11 }
 0x117   :  { %v465_v15 = vpop.f32.mrb[2].mxu0 }
 0x118   :  { %v466_v17 = vadd.f32 %v465_v15, %v115_v13  ;;  %v467_v18 = vpop.f32.mrb[3].mxu0 }
 0x119   :  { %v3149_v20 = vadd.f32 %v467_v18, %v115_v13  ;;  %v2670_v13 = vld [vmem:[%s3823_s5 + $0x60] ss:$8 sps:$4 sm:$0xff]   ;;  %v2673_v18 = vld [vmem:[%s3823_s5 + $0x70] ss:$8 sps:$4 sm:$0xff]  }
 0x11a   :  { %v540_v21 = vpack.c.bf16 %v466_v17, %v462_v16  ;;  %v2675_v16 = vld [vmem:[%s3823_s5 + $0x74] ss:$8 sps:$4 sm:$0xff]  }
 0x11c   :  { %2390 = vmatprep.mubr.bf16.mxu1 %v540_v21  ;;  %v160_v21 = vpop.permute.xlu0 %159 }
 0x11d   :  { %v471_v22 = vpop.f32.mrb[4].mxu0 }
 0x11e   :  { %v3151_v23 = vpop.f32.mrb[5].mxu0  ;;  %v472_v26 = vadd.f32 %v471_v22, %v3147_v19 }
 0x11f   :  { %v475_v25 = vpop.f32.mrb[6].mxu0 }
 0x120   :  { %v476_v27 = vadd.f32 %v475_v25, %v125_v24  ;;  %v477_v28 = vpop.f32.mrb[7].mxu0 }
 0x121   :  { %v3154_v29 = vadd.f32 %v477_v28, %v125_v24  ;;  %v165_v24 = vpop.permute.xlu1 %164 }
 0x122   :  { %v541_v31 = vpack.c.bf16 %v476_v27, %v472_v26 }
 0x124   :  { %2391 = vmatmul.mubr.bf16.vlgmr.msra.gmra.mrb[0].mxu1 %v541_v31 }
 0x125   :  { %v481_v33 = vpop.f32.mrb[8].mxu0  ;;  %833 = vmatpush1.bf16.msra.mxu1 %v2652_v30 }
 0x126   :  { %v483_v36 = vpop.f32.mrb[9].mxu0  ;;  %834 = vmatprep.subr.bf16.mxu1 %v2657_v32  ;;  %v482_v41 = vadd.f32 %v481_v33, %v130_v35 }
 0x127   :  { %v3168_v39 = vadd.f32 %v483_v36, %v130_v35  ;;  %v485_v40 = vpop.f32.mrb[10].mxu0  ;;  %v175_v36 = vpop.permute.xlu1 %174 }
 0x128   :  { %v486_v42 = vadd.f32 %v485_v40, %v135_v38  ;;  %v487_v43 = vpop.f32.mrb[11].mxu0 }
 0x129   :  { %v3170_v44 = vadd.f32 %v487_v43, %v135_v38  ;;  %835 = vmatpush1.bf16.msra.mxu1 %v2655_v34  ;;  %v170_v34 = vpop.permute.xlu0 %169 }
 0x12a   :  { %v542_v46 = vpack.c.bf16 %v486_v42, %v482_v41  ;;  %836 = vmatprep.subr.bf16.mxu1 %v2660_v37 }
 0x12c   :  { %2394 = vmatprep.mubr.bf16.mxu1 %v542_v46 }
 0x12d   :  { %v491_v48 = vpop.f32.mrb[12].mxu0  ;;  %837 = vmatpush1.bf16.msra.mxu1 %v2658_v45 }
 0x12e   :  { %v493_v51 = vpop.f32.mrb[13].mxu0  ;;  %838 = vmatprep.subr.bf16.mxu1 %v2663_v47  ;;  %v492_v56 = vadd.f32 %v491_v48, %v140_v50  ;;  %v180_v47 = vpop.permute.xlu0 %179 }
 0x12f   :  { %v3184_v54 = vadd.f32 %v493_v51, %v140_v50  ;;  %v495_v55 = vpop.f32.mrb[14].mxu0 }
 0x130   :  { %v496_v57 = vadd.f32 %v495_v55, %v145_v53  ;;  %v497_v58 = vpop.f32.mrb[15].mxu0 }
 0x131   :  { %v3186_v59 = vadd.f32 %v497_v58, %v145_v53  ;;  %839 = vmatpush1.bf16.msra.mxu1 %v2661_v49  ;;  %v185_v49 = vpop.permute.xlu1 %184  ;;  %v3231_v58 = vadd.f32 %v3151_v23, %v3147_v19 }
 0x132   :  { %v543_v61 = vpack.c.bf16 %v496_v57, %v492_v56  ;;  %840 = vmatprep.subr.bf16.mxu1 %v2666_v52  ;;  %v3224_v56 = vadd.f32 %v3144_v14, %v3142_v11  ;;  %v550_v11 = vpack.c.bf16 %v3170_v44, %v3168_v39 }
 0x133   :  { %v551_v14 = vpack.c.bf16 %v3186_v59, %v3184_v54 }
 0x134   :  { %2395 = vmatmul.mubr.bf16.gmra.mrb[4].mxu1 %v543_v61  ;;  %v548_v57 = vpack.c.bf16 %v3149_v20, %v3224_v56 }
 0x135   :  { %v501_v63 = vpop.f32.mrb[16].mxu0  ;;  %841 = vmatpush1.bf16.msra.mxu1 %v2664_v60  ;;  %v549_v60 = vpack.c.bf16 %v3154_v29, %v3231_v58 }
 0x136   :  { %v503_v3 = vpop.f32.mrb[17].mxu0  ;;  %842 = vmatprep.subr.bf16.mxu1 %v2669_v62  ;;  %v502_v8 = vadd.f32 %v501_v63, %v150_v1 }
 0x137   :  { %v3200_v6 = vadd.f32 %v503_v3, %v150_v1  ;;  %v505_v7 = vpop.f32.mrb[18].mxu0  ;;  %v2220_v1 = vld [vmem:[%s3822_s4] ss:$0 sm:$0xff] }
 0x138   :  { %v506_v9 = vadd.f32 %v505_v7, %v155_v5  ;;  %v507_v10 = vpop.f32.mrb[19].mxu0 }
 0x139   :  { %v3202_v12 = vadd.f32 %v507_v10, %v155_v5  ;;  %843 = vmatpush1.bf16.msra.mxu1 %v2667_v0 }
 0x13a   :  { %v544_v15 = vpack.c.bf16 %v506_v9, %v502_v8  ;;  %844 = vmatprep.subr.bf16.mxu1 %v2672_v4 }
 0x13b   :  { %v552_v19 = vpack.c.bf16 %v3202_v12, %v3200_v6 }
 0x13c   :  { %2398 = vmatprep.mubr.bf16.mxu1 %v544_v15 }
 0x13d   :  { %v511_v17 = vpop.f32.mrb[20].mxu0  ;;  %845 = vmatpush1.bf16.msra.mxu1 %v2670_v13 }
 0x13e   :  { %v513_v22 = vpop.f32.mrb[21].mxu0  ;;  %846 = vmatprep.subr.bf16.mxu1 %v2675_v16  ;;  %v512_v27 = vadd.f32 %v511_v17, %v160_v21 }
 0x13f   :  { %v3213_v25 = vadd.f32 %v513_v22, %v160_v21  ;;  %v515_v26 = vpop.f32.mrb[22].mxu0 }
 0x140   :  { %v516_v28 = vadd.f32 %v515_v26, %v165_v24  ;;  %v517_v30 = vpop.f32.mrb[23].mxu0 }
 0x141   :  { %v3215_v31 = vadd.f32 %v517_v30, %v165_v24  ;;  %847 = vmatpush1.bf16.msra.mxu1 %v2673_v18 }
 0x142   :  { %v545_v32 = vpack.c.bf16 %v516_v28, %v512_v27 }
 0x143   :  { %v553_v23 = vpack.c.bf16 %v3215_v31, %v3213_v25 }
 0x144   :  { %2399 = vmatmul.mubr.bf16.gmra.mrb[8].mxu1 %v545_v32 }
 0x145   :  { %v521_v33 = vpop.f32.mrb[24].mxu0 }
 0x146   :  { %v523_v35 = vpop.f32.mrb[25].mxu0  ;;  %v522_v40 = vadd.f32 %v521_v33, %v170_v34 }
 0x147   :  { %v3217_v37 = vadd.f32 %v523_v35, %v170_v34  ;;  %v525_v38 = vpop.f32.mrb[26].mxu0 }
 0x148   :  { %v526_v41 = vadd.f32 %v525_v38, %v175_v36  ;;  %v527_v42 = vpop.f32.mrb[27].mxu0 }
 0x149   :  { %v3219_v43 = vadd.f32 %v527_v42, %v175_v36 }
 0x14a   :  { %v546_v45 = vpack.c.bf16 %v526_v41, %v522_v40 }
 0x14b   :  { %v554_v61 = vpack.c.bf16 %v3219_v43, %v3217_v37 }
 0x14c   :  { %2402 = vmatprep.mubr.bf16.mxu1 %v546_v45 }
 0x14d   :  { %v531_v46 = vpop.f32.mrb[28].mxu0 }
 0x14e   :  { %v533_v48 = vpop.f32.mrb[29].mxu0  ;;  %v532_v51 = vadd.f32 %v531_v46, %v180_v47  ;;  %v742_v46 = vlaneseq }
 0x14f   :  { %v535_v50 = vpop.f32.mrb[30].mxu0  ;;  %v3253_v63 = vadd.f32 %v533_v48, %v180_v47 }
 0x150   :  { %v536_v52 = vadd.f32 %v535_v50, %v185_v49  ;;  %v537_v53 = vpop.f32.mrb[31].mxu0  ;;  %v743_v47 = vshrl.u32 %v742_v46, 7 }
 0x151   :  { %v3251_v62 = vadd.f32 %v537_v53, %v185_v49 }
 0x152   :  { %v547_v55 = vpack.c.bf16 %v536_v52, %v532_v51 }
 0x153   :  { %v555_v0 = vpack.c.bf16 %v3251_v62, %v3253_v63 }
 0x154   :  { %2403 = vmatmul.mubr.bf16.gmra.mrb[12].mxu1 %v547_v55 }
 0x155   :  { %864 = vmatprep.mubr.bf16.mxu1 %v2852_v2 }
 0x15c   :  { %865 = vmatmul.mubr.bf16.vlgmr.msra.gmra.mrb[16].mxu1 %v548_v57  ;;  %v744_v57 = vsub.s32 0, %v743_v47 }
 0x15d   :  { %874 = vmatprep.mubr.bf16.mxu1 %v2852_v2 }
 0x164   :  { %875 = vmatmul.mubr.bf16.gmra.mrb[20].mxu1 %v549_v60 }
 0x165   :  { %884 = vmatprep.mubr.bf16.mxu1 %v2852_v2 }
 0x16c   :  { %885 = vmatmul.mubr.bf16.gmra.mrb[24].mxu1 %v550_v11  ;;  %v740_v11 = vld [vmem:[%s3824_s6] sm:$0x3] }
 0x16d   :  { %894 = vmatprep.mubr.bf16.mxu1 %v2852_v2 }
 0x174   :  { %895 = vmatmul.mubr.bf16.gmra.mrb[28].mxu1 %v551_v14  ;;  %v748_v14 = vsub.s32 1, %v743_v47 }
 0x175   :  { %904 = vmatprep.mubr.bf16.mxu1 %v2852_v2 }
 0x17c   :  { %905 = vmatmul.mubr.bf16.gmra.mrb[32].mxu1 %v552_v19 }
 0x17d   :  { %914 = vmatprep.mubr.bf16.mxu1 %v2852_v2 }
 0x184   :  { %915 = vmatmul.mubr.bf16.gmra.mrb[36].mxu1 %v553_v23 }
 0x185   :  { %924 = vmatprep.mubr.bf16.mxu1 %v2852_v2 }
 0x18c   :  { %925 = vmatmul.mubr.bf16.gmra.mrb[40].mxu1 %v554_v61  ;;  %v3305_v61 = vrot.slane %v740_v11, %v744_v57 }
 0x18d   :  { %934 = vmatprep.mubr.bf16.mxu1 %v2852_v2 }
 0x194   :  { %935 = vmatmul.mubr.bf16.gmra.mrb[44].mxu1 %v555_v0 }
 0x1f7   :  { %v2392_v3 = vpop.f32.mrb[0].mxu1 }
 0x1f8   :  { %v3260_v4 = vadd.f32 %v2392_v3, %v2220_v1  ;;  %v661_v5 = vpop.f32.mrb[1].mxu1  ;;  %v3307_v3 = vrot.slane %v740_v11, %v748_v14 }
 0x1f9   :  { %v2393_v7 = vpop.f32.mrb[2].mxu1  ;;  %v662_v9 = vadd.f32 %v2220_v1, %v661_v5 }
 0x1fa   :  { %v3262_v8 = vadd.f32 %v2393_v7, %v2220_v1  ;;  %v664_v2 = vpop.f32.mrb[3].mxu1 }
 0x1fb   :  { %v665_v10 = vadd.f32 %v2220_v1, %v664_v2 }
 0x1fc   :  { %v946_v13 = vpack.c.bf16 %v3262_v8, %v3260_v4  ;;  %v961_v4 = vld [vmem:[%s3829_s11] sm:$0xff] }
 0x1fd   :  { %v945_v15 = vpack.c.bf16 %v665_v10, %v662_v9 }
 0x1ff   :  { %2422 = vmatprep.mubr.bf16.mxu0 %v945_v15 }
 0x207   :  { %v2396_v16 = vpop.f32.mrb[4].mxu1 }
 0x208   :  { %v3266_v17 = vadd.f32 %v2396_v16, %v2220_v1  ;;  %v677_v18 = vpop.f32.mrb[5].mxu1 }
 0x209   :  { %v3268_v21 = vadd.f32 %v2220_v1, %v677_v18  ;;  %v2397_v22 = vpop.f32.mrb[6].mxu1 }
 0x20a   :  { %v3270_v24 = vadd.f32 %v2397_v22, %v2220_v1  ;;  %v680_v26 = vpop.f32.mrb[7].mxu1 }
 0x20b   :  { %v3272_v27 = vadd.f32 %v2220_v1, %v680_v26 }
 0x20c   :  { %v948_v28 = vpack.c.bf16 %v3270_v24, %v3266_v17  ;;  %v962_v17 = vld [vmem:[%s3829_s11 + $0x8] sm:$0xff] }
 0x20d   :  { %v947_v30 = vpack.c.bf16 %v3272_v27, %v3268_v21  ;;  %v963_v27 = vld [vmem:[%s3829_s11 + $0x10] sm:$0xff] }
 0x217   :  { %v2400_v32 = vpop.f32.mrb[8].mxu1 }
 0x218   :  { %v3278_v33 = vadd.f32 %v2400_v32, %v2220_v1  ;;  %v693_v34 = vpop.f32.mrb[9].mxu1 }
 0x219   :  { %v3280_v35 = vadd.f32 %v2220_v1, %v693_v34  ;;  %v2401_v36 = vpop.f32.mrb[10].mxu1 }
 0x21a   :  { %v3282_v38 = vadd.f32 %v2401_v36, %v2220_v1  ;;  %v696_v40 = vpop.f32.mrb[11].mxu1 }
 0x21b   :  { %v3284_v41 = vadd.f32 %v2220_v1, %v696_v40 }
 0x21c   :  { %v950_v42 = vpack.c.bf16 %v3282_v38, %v3278_v33  ;;  %v965_v38 = vld [vmem:[%s3829_s11 + $0x20] sm:$0xff] }
 0x21d   :  { %v949_v45 = vpack.c.bf16 %v3284_v41, %v3280_v35  ;;  %v964_v35 = vld [vmem:[%s3829_s11 + $0x18] sm:$0xff] }
 0x227   :  { %v2404_v48 = vpop.f32.mrb[12].mxu1 }
 0x228   :  { %v3290_v49 = vadd.f32 %v2404_v48, %v2220_v1  ;;  %v709_v50 = vpop.f32.mrb[13].mxu1 }
 0x229   :  { %v3292_v51 = vadd.f32 %v2220_v1, %v709_v50  ;;  %v2405_v52 = vpop.f32.mrb[14].mxu1 }
 0x22a   :  { %v3294_v53 = vadd.f32 %v2405_v52, %v2220_v1  ;;  %v712_v55 = vpop.f32.mrb[15].mxu1 }
 0x22b   :  { %v3296_v60 = vadd.f32 %v2220_v1, %v712_v55 }
 0x22c   :  { %v952_v19 = vpack.c.bf16 %v3294_v53, %v3290_v49  ;;  %v967_v53 = vld [vmem:[%s3829_s11 + $0x30] sm:$0xff] }
 0x22d   :  { %v951_v23 = vpack.c.bf16 %v3296_v60, %v3292_v51 }
 0x22f   :  { %v866_v0 = vpop.f32.mrb[16].mxu1 }
 0x230   :  { %v868_v5 = vpop.f32.mrb[17].mxu1  ;;  %v867_v1 = vadd.f32 %v866_v0, %v3305_v61 }
 0x231   :  { %v870_v7 = vpop.f32.mrb[18].mxu1  ;;  %v869_v10 = vadd.f32 %v868_v5, %v3307_v3 }
 0x232   :  { %v871_v2 = vadd.f32 %v870_v7, %v3305_v61  ;;  %v872_v9 = vpop.f32.mrb[19].mxu1 }
 0x233   :  { %v873_v15 = vadd.f32 %v872_v9, %v3307_v3 }
 0x234   :  { %v953_v16 = vpack.c.bf16 %v871_v2, %v867_v1 }
 0x235   :  { %v1226_v18 = vpack.c.bf16 %v873_v15, %v869_v10 }
 0x236   :  { %2406 = vmatprep.subr.bf16.mxu0 %v953_v16 }
 0x237   :  { %v876_v22 = vpop.f32.mrb[20].mxu1  ;;  %2407 = vmatpush3.bf16.xpose.msra.mxu0 %v953_v16  ;;  %2438 = vmatprep.subr.bf16.mxu1 %v1226_v18 }
 0x238   :  { %v878_v26 = vpop.f32.mrb[21].mxu1  ;;  %2439 = vmatpush3.bf16.msra.mxu1 %v1226_v18  ;;  %v877_v34 = vadd.f32 %v876_v22, %v3305_v61 }
 0x239   :  { %v880_v32 = vpop.f32.mrb[22].mxu1  ;;  %v879_v46 = vadd.f32 %v878_v26, %v3307_v3 }
 0x23a   :  { %v881_v36 = vadd.f32 %v880_v32, %v3305_v61  ;;  %v882_v40 = vpop.f32.mrb[23].mxu1 }
 0x23b   :  { %v883_v47 = vadd.f32 %v882_v40, %v3307_v3 }
 0x23c   :  { %v954_v48 = vpack.c.bf16 %v881_v36, %v877_v34 }
 0x23d   :  { %v1227_v50 = vpack.c.bf16 %v883_v47, %v879_v46 }
 0x23e   :  { %2408 = vmatprep.subr.bf16.mxu0 %v954_v48 }
 0x23f   :  { %v886_v52 = vpop.f32.mrb[24].mxu1  ;;  %2409 = vmatpush3.bf16.xpose.msra.mxu0 %v954_v48  ;;  %2440 = vmatprep.subr.bf16.mxu1 %v1227_v50 }
 0x240   :  { %v888_v55 = vpop.f32.mrb[25].mxu1  ;;  %2441 = vmatpush3.bf16.msra.mxu1 %v1227_v50  ;;  %v887_v11 = vadd.f32 %v886_v52, %v3305_v61 }
 0x241   :  { %v890_v57 = vpop.f32.mrb[26].mxu1  ;;  %v889_v5 = vadd.f32 %v888_v55, %v3307_v3 }
 0x242   :  { %v891_v14 = vadd.f32 %v890_v57, %v3305_v61  ;;  %v892_v0 = vpop.f32.mrb[27].mxu1 }
 0x243   :  { %v893_v7 = vadd.f32 %v892_v0, %v3307_v3 }
 0x244   :  { %v955_v1 = vpack.c.bf16 %v891_v14, %v887_v11 }
 0x245   :  { %v1228_v2 = vpack.c.bf16 %v893_v7, %v889_v5 }
 0x246   :  { %2410 = vmatprep.subr.bf16.mxu0 %v955_v1 }
 0x247   :  { %v896_v9 = vpop.f32.mrb[28].mxu1  ;;  %2411 = vmatpush3.bf16.xpose.msra.mxu0 %v955_v1  ;;  %2442 = vmatprep.subr.bf16.mxu1 %v1228_v2 }
 0x248   :  { %v898_v10 = vpop.f32.mrb[29].mxu1  ;;  %2443 = vmatpush3.bf16.msra.mxu1 %v1228_v2  ;;  %v897_v16 = vadd.f32 %v896_v9, %v3305_v61 }
 0x249   :  { %v900_v15 = vpop.f32.mrb[30].mxu1  ;;  %v899_v26 = vadd.f32 %v898_v10, %v3307_v3 }
 0x24a   :  { %v901_v18 = vadd.f32 %v900_v15, %v3305_v61  ;;  %v902_v22 = vpop.f32.mrb[31].mxu1 }
 0x24b   :  { %v903_v32 = vadd.f32 %v902_v22, %v3307_v3 }
 0x24c   :  { %v956_v34 = vpack.c.bf16 %v901_v18, %v897_v16 }
 0x24d   :  { %v1229_v36 = vpack.c.bf16 %v903_v32, %v899_v26 }
 0x24e   :  { %2412 = vmatprep.subr.bf16.mxu0 %v956_v34 }
 0x24f   :  { %v906_v40 = vpop.f32.mrb[32].mxu1  ;;  %2413 = vmatpush3.bf16.xpose.msra.mxu0 %v956_v34  ;;  %2444 = vmatprep.subr.bf16.mxu1 %v1229_v36 }
 0x250   :  { %v908_v46 = vpop.f32.mrb[33].mxu1  ;;  %2445 = vmatpush3.bf16.msra.mxu1 %v1229_v36  ;;  %v907_v48 = vadd.f32 %v906_v40, %v3305_v61 }
 0x251   :  { %v910_v47 = vpop.f32.mrb[34].mxu1  ;;  %v909_v55 = vadd.f32 %v908_v46, %v3307_v3 }
 0x252   :  { %v911_v50 = vadd.f32 %v910_v47, %v3305_v61  ;;  %v912_v52 = vpop.f32.mrb[35].mxu1 }
 0x253   :  { %v913_v57 = vadd.f32 %v912_v52, %v3307_v3 }
 0x254   :  { %v957_v11 = vpack.c.bf16 %v911_v50, %v907_v48 }
 0x255   :  { %v1230_v14 = vpack.c.bf16 %v913_v57, %v909_v55 }
 0x256   :  { %2414 = vmatprep.subr.bf16.mxu0 %v957_v11 }
 0x257   :  { %v916_v0 = vpop.f32.mrb[36].mxu1  ;;  %2415 = vmatpush3.bf16.xpose.msra.mxu0 %v957_v11  ;;  %2446 = vmatprep.subr.bf16.mxu1 %v1230_v14 }
 0x258   :  { %v918_v5 = vpop.f32.mrb[37].mxu1  ;;  %2447 = vmatpush3.bf16.msra.mxu1 %v1230_v14  ;;  %v917_v1 = vadd.f32 %v916_v0, %v3305_v61 }
 0x259   :  { %v920_v7 = vpop.f32.mrb[38].mxu1  ;;  %v919_v10 = vadd.f32 %v918_v5, %v3307_v3 }
 0x25a   :  { %v921_v2 = vadd.f32 %v920_v7, %v3305_v61  ;;  %v922_v9 = vpop.f32.mrb[39].mxu1 }
 0x25b   :  { %v923_v15 = vadd.f32 %v922_v9, %v3307_v3  ;;  %v969_v9 = vld [vmem:[%s3829_s11 + $0x40] sm:$0xff] }
 0x25c   :  { %v958_v16 = vpack.c.bf16 %v921_v2, %v917_v1 }
 0x25d   :  { %v1231_v18 = vpack.c.bf16 %v923_v15, %v919_v10 }
 0x25e   :  { %2416 = vmatprep.subr.bf16.mxu0 %v958_v16 }
 0x25f   :  { %v926_v22 = vpop.f32.mrb[40].mxu1  ;;  %2417 = vmatpush3.bf16.xpose.msra.mxu0 %v958_v16  ;;  %2448 = vmatprep.subr.bf16.mxu1 %v1231_v18 }
 0x260   :  { %v928_v26 = vpop.f32.mrb[41].mxu1  ;;  %2449 = vmatpush3.bf16.msra.mxu1 %v1231_v18  ;;  %v927_v34 = vadd.f32 %v926_v22, %v3305_v61 }
 0x261   :  { %v930_v32 = vpop.f32.mrb[42].mxu1  ;;  %v929_v46 = vadd.f32 %v928_v26, %v3307_v3  ;;  %v971_v26 = vld [vmem:[%s3829_s11 + $0x50] sm:$0xff] }
 0x262   :  { %v931_v36 = vadd.f32 %v930_v32, %v3305_v61  ;;  %v932_v40 = vpop.f32.mrb[43].mxu1 }
 0x263   :  { %v933_v47 = vadd.f32 %v932_v40, %v3307_v3 }
 0x264   :  { %v959_v48 = vpack.c.bf16 %v931_v36, %v927_v34  ;;  %v970_v34 = vld [vmem:[%s3829_s11 + $0x48] sm:$0xff] }
 0x265   :  { %v1232_v50 = vpack.c.bf16 %v933_v47, %v929_v46  ;;  %v972_v46 = vld [vmem:[%s3829_s11 + $0x58] sm:$0xff]  ;;  %v973_v47 = vld [vmem:[%s3829_s11 + $0x60] sm:$0xff] }
 0x266   :  { %2418 = vmatprep.subr.bf16.mxu0 %v959_v48 }
 0x267   :  { %v936_v52 = vpop.f32.mrb[44].mxu1  ;;  %2419 = vmatpush3.bf16.xpose.msra.mxu0 %v959_v48  ;;  %2450 = vmatprep.subr.bf16.mxu1 %v1232_v50 }
 0x268   :  { %v938_v55 = vpop.f32.mrb[45].mxu1  ;;  %2451 = vmatpush3.bf16.msra.mxu1 %v1232_v50  ;;  %v937_v11 = vadd.f32 %v936_v52, %v3305_v61 }
 0x269   :  { %v940_v57 = vpop.f32.mrb[46].mxu1  ;;  %v939_v5 = vadd.f32 %v938_v55, %v3307_v3 }
 0x26a   :  { %v941_v14 = vadd.f32 %v940_v57, %v3305_v61  ;;  %v942_v0 = vpop.f32.mrb[47].mxu1 }
 0x26b   :  { %v943_v7 = vadd.f32 %v942_v0, %v3307_v3  ;;  %v968_v3 = vld [vmem:[%s3829_s11 + $0x38] sm:$0xff]  ;;  %v974_v0 = vld [vmem:[%s3829_s11 + $0x68] sm:$0xff] }
 0x26c   :  { %v960_v1 = vpack.c.bf16 %v941_v14, %v937_v11  ;;  %v975_v11 = vld [vmem:[%s3829_s11 + $0x70] sm:$0xff] }
 0x26d   :  { %v1233_v2 = vpack.c.bf16 %v943_v7, %v939_v5 }
 0x26e   :  { %2420 = vmatprep.subr.bf16.mxu0 %v960_v1 }
 0x26f   :  { %2421 = vmatpush3.bf16.xpose.msra.mxu0 %v960_v1  ;;  %2452 = vmatprep.subr.bf16.mxu1 %v1233_v2  ;;  %v976_v1 = vld [vmem:[%s3829_s11 + $0x78] sm:$0xff] }
 0x270   :  { %2453 = vmatpush3.bf16.msra.mxu1 %v1233_v2 }
 0x276   :  { %2423 = vmatmul.mubr.bf16.vlgmr.msra.gmra.mrb[32].mxu0 %v946_v13 }
 0x277   :  { %2426 = vmatprep.mubr.bf16.mxu0 %v947_v30 }
 0x27e   :  { %2427 = vmatmul.mubr.bf16.gmra.mrb[36].mxu0 %v948_v28 }
 0x27f   :  { %2430 = vmatprep.mubr.bf16.mxu0 %v949_v45 }
 0x286   :  { %2431 = vmatmul.mubr.bf16.gmra.mrb[40].mxu0 %v950_v42 }
 0x287   :  { %2434 = vmatprep.mubr.bf16.mxu0 %v951_v23 }
 0x28e   :  { %2435 = vmatmul.mubr.bf16.gmra.mrb[44].mxu0 %v952_v19  ;;  %v966_v19 = vld [vmem:[%s3829_s11 + $0x28] sm:$0xff] }
 0x349   :  { %v2424_v8 = vpop.f32.mrb[32].mxu0 }
 0x34a   :  { %v1011_v13 = vpop.f32.mrb[33].mxu0  ;;  %v3376_v33 = vadd.f32 %v2424_v8, %v963_v27 }
 0x34b   :  { %v3368_v21 = vadd.f32 %v1011_v13, %v961_v4  ;;  %v2425_v24 = vpop.f32.mrb[34].mxu0 }
 0x34c   :  { %v1014_v28 = vpop.f32.mrb[35].mxu0  ;;  %v3386_v45 = vadd.f32 %v2425_v24, %v964_v35 }
 0x34d   :  { %v3373_v30 = vadd.f32 %v1014_v28, %v962_v17  ;;  %1074 = vmax.xlane.f32.xlu0 %v3368_v21 }
 0x34f   :  { %1076 = vmax.xlane.f32.xlu1 %v3373_v30 }
 0x351   :  { %v2428_v41 = vpop.f32.mrb[36].mxu0  ;;  %1078 = vmax.xlane.f32.xlu0 %v3376_v33 }
 0x352   :  { %v1027_v42 = vpop.f32.mrb[37].mxu0  ;;  %v3395_v23 = vadd.f32 %v2428_v41, %v967_v53 }
 0x353   :  { %v1028_v49 = vadd.f32 %v1027_v42, %v965_v38  ;;  %v2429_v51 = vpop.f32.mrb[38].mxu0 }
 0x354   :  { %v1030_v60 = vpop.f32.mrb[39].mxu0  ;;  %v3407_v16 = vadd.f32 %v2429_v51, %v968_v3 }
 0x355   :  { %1082 = vmax.xlane.f32.xlu1 %v1028_v49  ;;  %1080 = vmax.xlane.f32.xlu0 %v3386_v45  ;;  %v3397_v61 = vadd.f32 %v1030_v60, %v966_v19 }
 0x359   :  { %v2432_v10 = vpop.f32.mrb[40].mxu0  ;;  %1086 = vmax.xlane.f32.xlu1 %v3395_v23  ;;  %1084 = vmax.xlane.f32.xlu0 %v3397_v61 }
 0x35a   :  { %v1043_v15 = vpop.f32.mrb[41].mxu0  ;;  %v3419_v36 = vadd.f32 %v2432_v10, %v971_v26 }
 0x35b   :  { %v3409_v18 = vadd.f32 %v1043_v15, %v969_v9  ;;  %v2433_v22 = vpop.f32.mrb[42].mxu0 }
 0x35c   :  { %v1046_v32 = vpop.f32.mrb[43].mxu0  ;;  %v3431_v52 = vadd.f32 %v2433_v22, %v972_v46 }
 0x35d   :  { %1090 = vmax.xlane.f32.xlu1 %v3409_v18  ;;  %1088 = vmax.xlane.f32.xlu0 %v3407_v16  ;;  %v3421_v40 = vadd.f32 %v1046_v32, %v970_v34 }
 0x361   :  { %v2436_v48 = vpop.f32.mrb[44].mxu0  ;;  %1094 = vmax.xlane.f32.xlu1 %v3419_v36  ;;  %1092 = vmax.xlane.f32.xlu0 %v3421_v40 }
 0x362   :  { %v1059_v50 = vpop.f32.mrb[45].mxu0  ;;  %v3443_v5 = vadd.f32 %v2436_v48, %v975_v11 }
 0x363   :  { %v3433_v55 = vadd.f32 %v1059_v50, %v973_v47  ;;  %v2437_v57 = vpop.f32.mrb[46].mxu0 }
 0x364   :  { %v1062_v14 = vpop.f32.mrb[47].mxu0  ;;  %v3452_v2 = vadd.f32 %v2437_v57, %v976_v1 }
 0x365   :  { %1098 = vmax.xlane.f32.xlu1 %v3433_v55  ;;  %1096 = vmax.xlane.f32.xlu0 %v3431_v52  ;;  %v3445_v7 = vadd.f32 %v1062_v14, %v974_v0 }
 0x369   :  { %1102 = vmax.xlane.f32.xlu1 %v3443_v5  ;;  %1100 = vmax.xlane.f32.xlu0 %v3445_v7 }
 0x36d   :  { %1104 = vmax.xlane.f32.xlu0 %v3452_v2 }
 0x3da   :  { %v1075_v4 = vpop.xlane.xlu0 %1074 }
 0x3db   :  { %v1106_v8 = vsub.f32 %v3368_v21, %v1075_v4 }
 0x3dc   :  { %v1077_v13 = vpop.xlane.xlu1 %1076 }
 0x3dd   :  { %v1122_v17 = vmul.f32 1.442695, %v1106_v8  ;;  %v1107_v24 = vsub.f32 %v3373_v30, %v1077_v13 }
 0x3de   :  { %v1079_v27 = vpop.xlane.xlu0 %1078 }
 0x3df   :  { %2700 = vpow2.f32 %v1122_v17  ;;  %v1124_v28 = vmul.f32 1.442695, %v1107_v24  ;;  %v1108_v35 = vsub.f32 %v3376_v33, %v1079_v27 }
 0x3e1   :  { %2702 = vpow2.f32 %v1124_v28  ;;  %v1126_v38 = vmul.f32 1.442695, %v1108_v35 }
 0x3e2   :  { %v1083_v41 = vpop.xlane.xlu1 %1082  ;;  %v1081_v42 = vpop.xlane.xlu0 %1080 }
 0x3e3   :  { %2704 = vpow2.f32 %v1126_v38  ;;  %v1110_v51 = vsub.f32 %v1028_v49, %v1083_v41  ;;  %v1109_v53 = vsub.f32 %v3386_v45, %v1081_v42 }
 0x3e5   :  { %v1130_v60 = vmul.f32 1.442695, %v1110_v51  ;;  %v1128_v19 = vmul.f32 1.442695, %v1109_v53 }
 0x3e6   :  { %v1087_v21 = vpop.xlane.xlu1 %1086  ;;  %v1085_v3 = vpop.xlane.xlu0 %1084 }
 0x3e7   :  { %2706 = vpow2.f32 %v1130_v60  ;;  %v1112_v30 = vsub.f32 %v3395_v23, %v1087_v21  ;;  %v1111_v9 = vsub.f32 %v3397_v61, %v1085_v3  ;;  %v1675_v3 = vld [vmem:[%s3828_s10] sm:$0xff] }
 0x3e8   :  { %2708 = vpow2.f32 %v1128_v19 }
 0x3e9   :  { %v3461_v10 = vpop.eup %2700  ;;  %v1134_v33 = vmul.f32 1.442695, %v1112_v30  ;;  %v1132_v15 = vmul.f32 1.442695, %v1111_v9  ;;  %v1677_v30 = vld [vmem:[%s3828_s10 + $0x10] sm:$0xff]  ;;  %v1678_v9 = vld [vmem:[%s3828_s10 + $0x18] sm:$0xff] }
 0x3ea   :  { %v1091_v22 = vpop.xlane.xlu1 %1090  ;;  %1154 = vadd.xlane.f32.xlu1 %v3461_v10  ;;  %v1089_v49 = vpop.xlane.xlu0 %1088 }
 0x3eb   :  { %v3464_v26 = vpop.eup %2702  ;;  %2710 = vpow2.f32 %v1134_v33  ;;  %v1114_v45 = vsub.f32 %v3409_v18, %v1091_v22  ;;  %v1113_v32 = vsub.f32 %v3407_v16, %v1089_v49  ;;  %v1676_v33 = vld [vmem:[%s3828_s10 + $0x8] sm:$0xff]  ;;  %v1679_v22 = vld [vmem:[%s3828_s10 + $0x20] sm:$0xff]  ;;  %v1682_v49 = vld [vmem:[%s3828_s10 + $0x38] sm:$0xff] }
 0x3ec   :  { %2712 = vpow2.f32 %v1132_v15  ;;  %1156 = vadd.xlane.f32.xlu0 %v3464_v26  ;;  %v1680_v15 = vld [vmem:[%s3828_s10 + $0x28] sm:$0xff] }
 0x3ed   :  { %v3469_v23 = vpop.eup %2704  ;;  %v1138_v61 = vmul.f32 1.442695, %v1114_v45  ;;  %v1136_v34 = vmul.f32 1.442695, %v1113_v32  ;;  %v1681_v45 = vld [vmem:[%s3828_s10 + $0x30] sm:$0xff]  ;;  %v1684_v32 = vld [vmem:[%s3828_s10 + $0x48] sm:$0xff] }
 0x3ee   :  { %v1095_v46 = vpop.xlane.xlu1 %1094  ;;  %1158 = vadd.xlane.f32.xlu1 %v3469_v23  ;;  %v1093_v47 = vpop.xlane.xlu0 %1092 }
 0x3ef   :  { %2714 = vpow2.f32 %v1138_v61  ;;  %v1116_v48 = vsub.f32 %v3419_v36, %v1095_v46  ;;  %v1115_v50 = vsub.f32 %v3421_v40, %v1093_v47  ;;  %v1683_v61 = vld [vmem:[%s3828_s10 + $0x40] sm:$0xff]  ;;  %v1685_v46 = vld [vmem:[%s3828_s10 + $0x50] sm:$0xff]  ;;  %v1688_v47 = vld [vmem:[%s3828_s10 + $0x68] sm:$0xff] }
 0x3f0   :  { %2716 = vpow2.f32 %v1136_v34  ;;  %v1686_v34 = vld [vmem:[%s3828_s10 + $0x58] sm:$0xff] }
 0x3f1   :  { %v3474_v18 = vpop.eup %2706  ;;  %v1142_v16 = vmul.f32 1.442695, %v1116_v48  ;;  %v1140_v57 = vmul.f32 1.442695, %v1115_v50  ;;  %v1687_v48 = vld [vmem:[%s3828_s10 + $0x60] sm:$0xff]  ;;  %v1690_v50 = vld [vmem:[%s3828_s10 + $0x78] sm:$0xff] }
 0x3f2   :  { %v3476_v11 = vpop.eup %2708  ;;  %v1099_v14 = vpop.xlane.xlu1 %1098  ;;  %1162 = vadd.xlane.f32.xlu1 %v3474_v18 }
 0x3f3   :  { %v1097_v0 = vpop.xlane.xlu0 %1096  ;;  %2718 = vpow2.f32 %v1142_v16  ;;  %v1118_v1 = vsub.f32 %v3433_v55, %v1099_v14  ;;  %1160 = vadd.xlane.f32.xlu0 %v3476_v11  ;;  %v1689_v16 = vld [vmem:[%s3828_s10 + $0x70] sm:$0xff]  ;;  %v1691_v14 = vld [vmem:[%s3828_s10 + $0x80] sm:$0xff] }
 0x3f4   :  { %v1117_v36 = vsub.f32 %v3431_v52, %v1097_v0  ;;  %2720 = vpow2.f32 %v1140_v57  ;;  %v1692_v57 = vld [vmem:[%s3828_s10 + $0x88] sm:$0xff]  ;;  %v1694_v0 = vld [vmem:[%s3828_s10 + $0x98] sm:$0xff] }
 0x3f5   :  { %v3482_v40 = vpop.eup %2710  ;;  %v1146_v4 = vmul.f32 1.442695, %v1118_v1  ;;  %v1693_v1 = vld [vmem:[%s3828_s10 + $0x90] sm:$0xff] }
 0x3f6   :  { %v1144_v8 = vmul.f32 1.442695, %v1117_v36  ;;  %v3484_v13 = vpop.eup %2712  ;;  %v1103_v17 = vpop.xlane.xlu1 %1102  ;;  %1166 = vadd.xlane.f32.xlu1 %v3482_v40  ;;  %v1696_v36 = vld [vmem:[%s3828_s10 + $0xa8] sm:$0xff] }
 0x3f7   :  { %v1101_v24 = vpop.xlane.xlu0 %1100  ;;  %2722 = vpow2.f32 %v1146_v4  ;;  %v1120_v27 = vsub.f32 %v3443_v5, %v1103_v17  ;;  %1164 = vadd.xlane.f32.xlu0 %v3484_v13  ;;  %v1695_v4 = vld [vmem:[%s3828_s10 + $0xa0] sm:$0xff]  ;;  %v1697_v17 = vld [vmem:[%s3828_s10 + $0xb0] sm:$0xff] }
 0x3f8   :  { %v1119_v55 = vsub.f32 %v3445_v7, %v1101_v24  ;;  %2724 = vpow2.f32 %v1144_v8  ;;  %v1698_v8 = vld [vmem:[%s3828_s10 + $0xb8] sm:$0xff]  ;;  %v1700_v24 = vld [vmem:[%s3828_s10 + $0xc8] sm:$0xff] }
 0x3f9   :  { %v3490_v52 = vpop.eup %2714  ;;  %v1150_v28 = vmul.f32 1.442695, %v1120_v27  ;;  %v1699_v27 = vld [vmem:[%s3828_s10 + $0xc0] sm:$0xff] }
 0x3fa   :  { %v1148_v35 = vmul.f32 1.442695, %v1119_v55  ;;  %v3492_v38 = vpop.eup %2716  ;;  %1170 = vadd.xlane.f32.xlu1 %v3490_v52  ;;  %v1702_v55 = vld [vmem:[%s3828_s10 + $0xd8] sm:$0xff] }
 0x3fb   :  { %v1105_v41 = vpop.xlane.xlu0 %1104  ;;  %2726 = vpow2.f32 %v1150_v28  ;;  %1168 = vadd.xlane.f32.xlu0 %v3492_v38  ;;  %v1701_v28 = vld [vmem:[%s3828_s10 + $0xd0] sm:$0xff] }
 0x3fc   :  { %v1121_v42 = vsub.f32 %v3452_v2, %v1105_v41  ;;  %2728 = vpow2.f32 %v1148_v35  ;;  %v1704_v35 = vld [vmem:[%s3828_s10 + $0xe8] sm:$0xff]  ;;  %v1703_v41 = vld [vmem:[%s3828_s10 + $0xe0] sm:$0xff] }
 0x3fd   :  { %v3497_v5 = vpop.eup %2718 }
 0x3fe   :  { %v1152_v51 = vmul.f32 1.442695, %v1121_v42  ;;  %v3499_v7 = vpop.eup %2720  ;;  %1174 = vadd.xlane.f32.xlu1 %v3497_v5  ;;  %v1706_v42 = vld [vmem:[%s3828_s10 + $0xf8] sm:$0xff] }
 0x3ff   :  { %1172 = vadd.xlane.f32.xlu0 %v3499_v7 }
 0x400   :  { %2730 = vpow2.f32 %v1152_v51  ;;  %v1705_v51 = vld [vmem:[%s3828_s10 + $0xf0] sm:$0xff] }
 0x401   :  { %v3503_v53 = vpop.eup %2722 }
 0x402   :  { %v3505_v60 = vpop.eup %2724  ;;  %1178 = vadd.xlane.f32.xlu1 %v3503_v53 }
 0x403   :  { %1176 = vadd.xlane.f32.xlu0 %v3505_v60 }
 0x405   :  { %v3509_v2 = vpop.eup %2726 }
 0x406   :  { %v3511_v19 = vpop.eup %2728  ;;  %1182 = vadd.xlane.f32.xlu1 %v3509_v2 }
 0x407   :  { %1180 = vadd.xlane.f32.xlu0 %v3511_v19 }
 0x40a   :  { %v3515_v21 = vpop.eup %2730 }
 0x40b   :  { %1184 = vadd.xlane.f32.xlu0 %v3515_v21 }
 0x417   :  { %1709 = vperm.xlu1 %2571, %v1675_v3   ;;  %v2676_v3 = vld [vmem:[%s3825_s7] sm:$0xff]  }
 0x418   :  { %2470 = vmatprep.subr.bf16.mxu0 %v2676_v3 }
 0x419   :  { %2471 = vmatpush3.bf16.msra.mxu0 %v2676_v3 }
 0x41b   :  { %1719 = vperm.xlu1 %2571, %v1677_v30   ;;  %v2677_v30 = vld [vmem:[%s3825_s7 + $0x8] sm:$0xff]  }
 0x41c   :  { %2472 = vmatprep.subr.bf16.mxu0 %v2677_v30 }
 0x41d   :  { %2473 = vmatpush3.bf16.msra.mxu0 %v2677_v30 }
 0x41f   :  { %1724 = vperm.xlu1 %2571, %v1678_v9   ;;  %v2678_v9 = vld [vmem:[%s3825_s7 + $0x10] sm:$0xff]  }
 0x420   :  { %2474 = vmatprep.subr.bf16.mxu0 %v2678_v9 }
 0x421   :  { %1714 = vperm.xlu0 %2570, %v1676_v33   ;;  %v2679_v33 = vld [vmem:[%s3825_s7 + $0x18] sm:$0xff]   ;;  %2475 = vmatpush3.bf16.msra.mxu0 %v2678_v9 }
 0x422   :  { %2476 = vmatprep.subr.bf16.mxu0 %v2679_v33 }
 0x423   :  { %1734 = vperm.xlu1 %2571, %v1680_v15   ;;  %v2680_v15 = vld [vmem:[%s3825_s7 + $0x20] sm:$0xff]  }
 0x425   :  { %1729 = vperm.xlu0 %2570, %v1679_v22   ;;  %2477 = vmatpush3.bf16.msra.mxu0 %v2679_v33  ;;  %v2681_v22 = vld [vmem:[%s3825_s7 + $0x28] sm:$0xff]  }
 0x426   :  { %2478 = vmatprep.subr.bf16.mxu0 %v2680_v15 }
 0x427   :  { %1744 = vperm.xlu1 %2571, %v1682_v49   ;;  %v2682_v49 = vld [vmem:[%s3825_s7 + $0x30] sm:$0xff]  }
 0x429   :  { %1739 = vperm.xlu0 %2570, %v1681_v45   ;;  %2479 = vmatpush3.bf16.msra.mxu0 %v2680_v15 }
 0x42a   :  { %2480 = vmatprep.subr.bf16.mxu0 %v2681_v22 }
 0x42b   :  { %1754 = vperm.xlu1 %2571, %v1684_v32  }
 0x42d   :  { %1749 = vperm.xlu0 %2570, %v1683_v61   ;;  %2481 = vmatpush3.bf16.msra.mxu0 %v2681_v22 }
 0x42e   :  { %2482 = vmatprep.subr.bf16.mxu0 %v2682_v49 }
 0x42f   :  { %1764 = vperm.xlu1 %2571, %v1686_v34  }
 0x431   :  { %1759 = vperm.xlu0 %2570, %v1685_v46   ;;  %2483 = vmatpush3.bf16.msra.mxu0 %v2682_v49 }
 0x433   :  { %1774 = vperm.xlu1 %2571, %v1688_v47  }
 0x435   :  { %1769 = vperm.xlu0 %2570, %v1687_v48  }
 0x437   :  { %1784 = vperm.xlu1 %2571, %v1690_v50  }
 0x439   :  { %1779 = vperm.xlu0 %2570, %v1689_v16  }
 0x43b   :  { %1794 = vperm.xlu1 %2571, %v1692_v57  }
 0x43d   :  { %1789 = vperm.xlu0 %2570, %v1691_v14  }
 0x43f   :  { %1804 = vperm.xlu1 %2571, %v1694_v0  }
 0x441   :  { %1799 = vperm.xlu0 %2570, %v1693_v1  }
 0x443   :  { %1814 = vperm.xlu1 %2571, %v1696_v36  }
 0x445   :  { %1809 = vperm.xlu0 %2570, %v1695_v4  }
 0x447   :  { %1824 = vperm.xlu1 %2571, %v1698_v8  }
 0x449   :  { %1819 = vperm.xlu0 %2570, %v1697_v17  }
 0x44b   :  { %1834 = vperm.xlu1 %2571, %v1700_v24  }
 0x44d   :  { %1829 = vperm.xlu0 %2570, %v1699_v27  }
 0x44f   :  { %1844 = vperm.xlu1 %2571, %v1702_v55  }
 0x451   :  { %1839 = vperm.xlu0 %2570, %v1701_v28  }
 0x453   :  { %1854 = vperm.xlu1 %2571, %v1704_v35  }
 0x455   :  { %1849 = vperm.xlu0 %2570, %v1703_v41  }
 0x457   :  { %1864 = vperm.xlu1 %2571, %v1706_v42  }
 0x459   :  { %1859 = vperm.xlu0 %2570, %v1705_v51  }
 0x477   :  { %v1155_v45 = vpop.xlane.xlu1 %1154 }
 0x478   :  { %2732 = vrcp.f32 %v1155_v45 }
 0x479   :  { %v1157_v32 = vpop.xlane.xlu0 %1156 }
 0x47a   :  { %2734 = vrcp.f32 %v1157_v32 }
 0x47b   :  { %v1159_v61 = vpop.xlane.xlu1 %1158 }
 0x47c   :  { %2736 = vrcp.f32 %v1159_v61 }
 0x47f   :  { %v1163_v34 = vpop.xlane.xlu1 %1162 }
 0x480   :  { %v1161_v46 = vpop.xlane.xlu0 %1160 }
 0x481   :  { %2738 = vrcp.f32 %v1161_v46 }
 0x482   :  { %v2733_v47 = vpop.eup %2732  ;;  %2740 = vrcp.f32 %v1163_v34 }
 0x483   :  { %v1167_v48 = vpop.xlane.xlu1 %1166  ;;  %v1202_v57 = vmul.f32 %v2733_v47, %v3461_v10 }
 0x484   :  { %v2735_v50 = vpop.eup %2734  ;;  %v1165_v16 = vpop.xlane.xlu0 %1164 }
 0x485   :  { %2742 = vrcp.f32 %v1165_v16  ;;  %v1203_v14 = vmul.f32 %v2735_v50, %v3464_v26 }
 0x486   :  { %2744 = vrcp.f32 %v1167_v48  ;;  %v2737_v4 = vpop.eup %2736 }
 0x487   :  { %v1171_v0 = vpop.xlane.xlu1 %1170  ;;  %v1218_v1 = vpack.c.bf16 %v1203_v14, %v1202_v57  ;;  %v1204_v24 = vmul.f32 %v2737_v4, %v3469_v23 }
 0x488   :  { %v1169_v36 = vpop.xlane.xlu0 %1168 }
 0x489   :  { %2746 = vrcp.f32 %v1169_v36  ;;  %2454 = vmatprep.mubr.bf16.mxu1 %v1218_v1 }
 0x48a   :  { %2748 = vrcp.f32 %v1171_v0 }
 0x48b   :  { %v2739_v8 = vpop.eup %2738  ;;  %v1175_v17 = vpop.xlane.xlu1 %1174 }
 0x48c   :  { %v1205_v27 = vmul.f32 %v2739_v8, %v3476_v11  ;;  %v1173_v55 = vpop.xlane.xlu0 %1172  ;;  %v2741_v28 = vpop.eup %2740 }
 0x48d   :  { %2750 = vrcp.f32 %v1173_v55  ;;  %v1206_v42 = vmul.f32 %v2741_v28, %v3474_v18 }
 0x48e   :  { %v1219_v10 = vpack.c.bf16 %v1205_v27, %v1204_v24  ;;  %2752 = vrcp.f32 %v1175_v17 }
 0x48f   :  { %v2743_v35 = vpop.eup %2742  ;;  %v1179_v26 = vpop.xlane.xlu1 %1178 }
 0x490   :  { %2455 = vmatmul.mubr.bf16.vlgmr.msra.gmra.mrb[48].mxu1 %v1219_v10  ;;  %v1177_v41 = vpop.xlane.xlu0 %1176  ;;  %v1207_v51 = vmul.f32 %v2743_v35, %v3484_v13  ;;  %v2745_v3 = vpop.eup %2744 }
 0x491   :  { %2754 = vrcp.f32 %v1177_v41  ;;  %v1208_v33 = vmul.f32 %v2745_v3, %v3482_v40 }
 0x492   :  { %v1220_v30 = vpack.c.bf16 %v1207_v51, %v1206_v42  ;;  %2756 = vrcp.f32 %v1179_v26 }
 0x493   :  { %v2747_v9 = vpop.eup %2746  ;;  %v1183_v23 = vpop.xlane.xlu1 %1182 }
 0x494   :  { %2458 = vmatprep.mubr.bf16.mxu1 %v1220_v30  ;;  %v1181_v11 = vpop.xlane.xlu0 %1180  ;;  %v1209_v15 = vmul.f32 %v2747_v9, %v3492_v38  ;;  %v2749_v22 = vpop.eup %2748 }
 0x495   :  { %2758 = vrcp.f32 %v1181_v11  ;;  %v1210_v13 = vmul.f32 %v2749_v22, %v3490_v52  ;;  %v2685_v22 = vld [vmem:[%s3827_s9 + $0x20] sm:$0xff]  }
 0x496   :  { %v1221_v49 = vpack.c.bf16 %v1209_v15, %v1208_v33  ;;  %2760 = vrcp.f32 %v1183_v23  ;;  %v2684_v15 = vld [vmem:[%s3827_s9] sm:$0xff]  }
 0x497   :  { %v2751_v45 = vpop.eup %2750 }
 0x498   :  { %2459 = vmatmul.mubr.bf16.gmra.mrb[52].mxu1 %v1221_v49  ;;  %v1185_v18 = vpop.xlane.xlu0 %1184  ;;  %v1211_v32 = vmul.f32 %v2751_v45, %v3499_v7  ;;  %v2753_v61 = vpop.eup %2752  ;;  %v3711_v49 = vld [vmem:[%s3826_s8] ss:$0 sm:$0xff] }
 0x499   :  { %2762 = vrcp.f32 %v1185_v18  ;;  %v1212_v40 = vmul.f32 %v2753_v61, %v3497_v5  ;;  %v2683_v5 = vld [vmem:[%s3825_s7 + $0x38] sm:$0xff]  }
 0x49a   :  { %v1222_v34 = vpack.c.bf16 %v1211_v32, %v1210_v13  ;;  %2484 = vmatprep.subr.bf16.mxu0 %v2683_v5 }
 0x49b   :  { %v2755_v46 = vpop.eup %2754  ;;  %2485 = vmatpush3.bf16.msra.mxu0 %v2683_v5 }
 0x49c   :  { %2462 = vmatprep.mubr.bf16.mxu1 %v1222_v34  ;;  %v1213_v38 = vmul.f32 %v2755_v46, %v3505_v60  ;;  %v2757_v47 = vpop.eup %2756 }
 0x49d   :  { %v1214_v16 = vmul.f32 %v2757_v47, %v3503_v53 }
 0x49e   :  { %v1223_v48 = vpack.c.bf16 %v1213_v38, %v1212_v40 }
 0x49f   :  { %v2759_v50 = vpop.eup %2758 }
 0x4a0   :  { %2463 = vmatmul.mubr.bf16.gmra.mrb[56].mxu1 %v1223_v48  ;;  %v1215_v57 = vmul.f32 %v2759_v50, %v3511_v19  ;;  %v2761_v52 = vpop.eup %2760 }
 0x4a1   :  { %v1216_v0 = vmul.f32 %v2761_v52, %v3509_v2 }
 0x4a2   :  { %v1224_v14 = vpack.c.bf16 %v1215_v57, %v1214_v16 }
 0x4a3   :  { %v2763_v7 = vpop.eup %2762 }
 0x4a4   :  { %2466 = vmatprep.mubr.bf16.mxu1 %v1224_v14  ;;  %v1217_v1 = vmul.f32 %v2763_v7, %v3515_v21 }
 0x4a6   :  { %v1225_v36 = vpack.c.bf16 %v1217_v1, %v1216_v0 }
 0x4a8   :  { %2467 = vmatmul.mubr.bf16.gmra.mrb[60].mxu1 %v1225_v36 }
 0x4a9   :  { %2526 = vmatprep.mubr.bf16.mxu1 %v2685_v22 }
 0x563   :  { %v3654_v60 = vpop.f32.mrb[48].mxu1 }
 0x564   :  { %v3656_v53 = vpop.f32.mrb[49].mxu1 }
 0x565   :  { %v3658_v19 = vpop.f32.mrb[50].mxu1 }
 0x566   :  { %v1332_v4 = vpack.c.bf16 %v3658_v19, %v3654_v60  ;;  %v3662_v2 = vpop.f32.mrb[51].mxu1 }
 0x567   :  { %v1331_v21 = vpack.c.bf16 %v3662_v2, %v3656_v53 }
 0x569   :  { %2486 = vmatprep.mubr.bf16.mxu0 %v1331_v21 }
 0x56a   :  { %2487 = vmatmul.mubr.bf16.vlgmr.msra.gmra.mrb[48].mxu0 %v1332_v4 }
 0x56b   :  { %v3666_v8 = vpop.f32.mrb[52].mxu1 }
 0x56c   :  { %v3668_v17 = vpop.f32.mrb[53].mxu1 }
 0x56d   :  { %v3670_v24 = vpop.f32.mrb[54].mxu1 }
 0x56e   :  { %v1334_v27 = vpack.c.bf16 %v3670_v24, %v3666_v8  ;;  %v3674_v55 = vpop.f32.mrb[55].mxu1 }
 0x56f   :  { %v1333_v28 = vpack.c.bf16 %v3674_v55, %v3668_v17 }
 0x571   :  { %2490 = vmatprep.mubr.bf16.mxu0 %v1333_v28 }
 0x572   :  { %2491 = vmatmul.mubr.bf16.gmra.mrb[52].mxu0 %v1334_v27 }
 0x573   :  { %v3678_v10 = vpop.f32.mrb[56].mxu1 }
 0x574   :  { %v3680_v35 = vpop.f32.mrb[57].mxu1 }
 0x575   :  { %v3682_v26 = vpop.f32.mrb[58].mxu1 }
 0x576   :  { %v1336_v41 = vpack.c.bf16 %v3682_v26, %v3678_v10  ;;  %v3686_v42 = vpop.f32.mrb[59].mxu1 }
 0x577   :  { %v1335_v51 = vpack.c.bf16 %v3686_v42, %v3680_v35 }
 0x579   :  { %2494 = vmatprep.mubr.bf16.mxu0 %v1335_v51 }
 0x57a   :  { %2495 = vmatmul.mubr.bf16.gmra.mrb[56].mxu0 %v1336_v41 }
 0x57b   :  { %v3690_v3 = vpop.f32.mrb[60].mxu1 }
 0x57c   :  { %v3692_v30 = vpop.f32.mrb[61].mxu1 }
 0x57d   :  { %v3694_v9 = vpop.f32.mrb[62].mxu1 }
 0x57e   :  { %v1338_v23 = vpack.c.bf16 %v3694_v9, %v3690_v3  ;;  %v3698_v11 = vpop.f32.mrb[63].mxu1 }
 0x57f   :  { %v1337_v33 = vpack.c.bf16 %v3698_v11, %v3692_v30 }
 0x581   :  { %2498 = vmatprep.mubr.bf16.mxu0 %v1337_v33 }
 0x582   :  { %2499 = vmatmul.mubr.bf16.gmra.mrb[60].mxu0 %v1338_v23 }
 0x583   :  { %2518 = vmatprep.mubr.bf16.mxu0 %v2684_v15 }
 0x63d   :  { %v2488_v45 = vpop.f32.mrb[48].mxu0 }
 0x63e   :  { %v1453_v18 = vadd.f32 %v2488_v45, %v3711_v49  ;;  %v1444_v13 = vpop.f32.mrb[49].mxu0 }
 0x63f   :  { %v1445_v32 = vadd.f32 %v3711_v49, %v1444_v13  ;;  %v2489_v61 = vpop.f32.mrb[50].mxu0 }
 0x640   :  { %v2256_v34 = vmul.f32 -1.442695, %v1453_v18  ;;  %v1456_v46 = vadd.f32 %v2489_v61, %v3711_v49  ;;  %v1447_v40 = vpop.f32.mrb[51].mxu0 }
 0x641   :  { %v2254_v38 = vmul.f32 -1.442695, %v1445_v32  ;;  %v1448_v47 = vadd.f32 %v3711_v49, %v1447_v40 }
 0x642   :  { %2764 = vpow2.f32 %v2256_v34  ;;  %v2257_v48 = vmul.f32 -1.442695, %v1456_v46 }
 0x643   :  { %2766 = vpow2.f32 %v2254_v38  ;;  %v2255_v50 = vmul.f32 -1.442695, %v1448_v47 }
 0x644   :  { %2768 = vpow2.f32 %v2257_v48 }
 0x645   :  { %2770 = vpow2.f32 %v2255_v50  ;;  %v2492_v16 = vpop.f32.mrb[52].mxu0 }
 0x646   :  { %v1469_v57 = vadd.f32 %v2492_v16, %v3711_v49  ;;  %v1460_v52 = vpop.f32.mrb[53].mxu0 }
 0x647   :  { %v1461_v14 = vadd.f32 %v3711_v49, %v1460_v52  ;;  %v2493_v7 = vpop.f32.mrb[54].mxu0 }
 0x648   :  { %v2260_v0 = vmul.f32 -1.442695, %v1469_v57  ;;  %v1472_v1 = vadd.f32 %v2493_v7, %v3711_v49  ;;  %v1463_v36 = vpop.f32.mrb[55].mxu0 }
 0x649   :  { %v2258_v5 = vmul.f32 -1.442695, %v1461_v14  ;;  %v1464_v4 = vadd.f32 %v3711_v49, %v1463_v36 }
 0x64a   :  { %2772 = vpow2.f32 %v2260_v0  ;;  %v2261_v21 = vmul.f32 -1.442695, %v1472_v1 }
 0x64b   :  { %2774 = vpow2.f32 %v2258_v5  ;;  %v2259_v27 = vmul.f32 -1.442695, %v1464_v4 }
 0x64c   :  { %v2765_v28 = vpop.eup %2764  ;;  %2776 = vpow2.f32 %v2261_v21 }
 0x64d   :  { %v2767_v41 = vpop.eup %2766  ;;  %v1557_v51 = vadd.f32 1.0, %v2765_v28  ;;  %2778 = vpow2.f32 %v2259_v27  ;;  %v2496_v23 = vpop.f32.mrb[56].mxu0 }
 0x64e   :  { %v2769_v33 = vpop.eup %2768  ;;  %v1555_v15 = vadd.f32 1.0, %v2767_v41  ;;  %v1485_v22 = vadd.f32 %v2496_v23, %v3711_v49  ;;  %v1476_v45 = vpop.f32.mrb[57].mxu0 }
 0x64f   :  { %v2771_v18 = vpop.eup %2770  ;;  %2780 = vrcp.f32 %v1557_v51  ;;  %v1558_v13 = vadd.f32 1.0, %v2769_v33  ;;  %v1477_v32 = vadd.f32 %v3711_v49, %v1476_v45  ;;  %v2497_v61 = vpop.f32.mrb[58].mxu0 }
 0x650   :  { %2782 = vrcp.f32 %v1555_v15  ;;  %v1556_v34 = vadd.f32 1.0, %v2771_v18  ;;  %v2264_v46 = vmul.f32 -1.442695, %v1485_v22  ;;  %v1488_v40 = vadd.f32 %v2497_v61, %v3711_v49  ;;  %v1479_v38 = vpop.f32.mrb[59].mxu0 }
 0x651   :  { %2784 = vrcp.f32 %v1558_v13  ;;  %v2262_v47 = vmul.f32 -1.442695, %v1477_v32  ;;  %v1480_v48 = vadd.f32 %v3711_v49, %v1479_v38 }
 0x652   :  { %2786 = vrcp.f32 %v1556_v34  ;;  %v2265_v50 = vmul.f32 -1.442695, %v1488_v40 }
 0x653   :  { %2788 = vpow2.f32 %v2264_v46  ;;  %v2263_v16 = vmul.f32 -1.442695, %v1480_v48 }
 0x654   :  { %v2773_v57 = vpop.eup %2772  ;;  %2790 = vpow2.f32 %v2262_v47 }
 0x655   :  { %v2775_v52 = vpop.eup %2774  ;;  %v1561_v14 = vadd.f32 1.0, %v2773_v57  ;;  %2792 = vpow2.f32 %v2265_v50  ;;  %v2500_v7 = vpop.f32.mrb[60].mxu0 }
 0x656   :  { %v2777_v0 = vpop.eup %2776  ;;  %v1559_v1 = vadd.f32 1.0, %v2775_v52  ;;  %2794 = vpow2.f32 %v2263_v16  ;;  %v1501_v36 = vadd.f32 %v2500_v7, %v3711_v49  ;;  %v1492_v5 = vpop.f32.mrb[61].mxu0 }
 0x657   :  { %v2779_v4 = vpop.eup %2778  ;;  %2796 = vrcp.f32 %v1561_v14  ;;  %v1562_v21 = vadd.f32 1.0, %v2777_v0  ;;  %v1493_v27 = vadd.f32 %v3711_v49, %v1492_v5  ;;  %v2501_v28 = vpop.f32.mrb[62].mxu0 }
 0x658   :  { %2798 = vrcp.f32 %v1559_v1  ;;  %v1560_v41 = vadd.f32 1.0, %v2779_v4  ;;  %v2268_v51 = vmul.f32 -1.442695, %v1501_v36  ;;  %v1504_v23 = vadd.f32 %v2501_v28, %v3711_v49  ;;  %v1495_v33 = vpop.f32.mrb[63].mxu0 }
 0x659   :  { %v2781_v15 = vpop.eup %2780  ;;  %2800 = vrcp.f32 %v1562_v21  ;;  %v2266_v22 = vmul.f32 -1.442695, %v1493_v27  ;;  %v1496_v45 = vadd.f32 %v3711_v49, %v1495_v33 }
 0x65a   :  { %v2783_v18 = vpop.eup %2782  ;;  %2802 = vrcp.f32 %v1560_v41  ;;  %v2269_v13 = vmul.f32 -1.442695, %v1504_v23  ;;  %v1605_v32 = vmul.f32 %v2781_v15, %v3654_v60 }
 0x65b   :  { %v2785_v61 = vpop.eup %2784  ;;  %2804 = vpow2.f32 %v2268_v51  ;;  %v2267_v34 = vmul.f32 -1.442695, %v1496_v45  ;;  %v1603_v46 = vmul.f32 %v2783_v18, %v3656_v53 }
 0x65c   :  { %v2787_v40 = vpop.eup %2786  ;;  %2806 = vpow2.f32 %v2266_v22  ;;  %v1606_v38 = vmul.f32 %v2785_v61, %v3658_v19  ;;  %v1621_v16 = vadd.f32 %v1605_v32, %v3231_v58 }
 0x65d   :  { %v2789_v47 = vpop.eup %2788  ;;  %2808 = vpow2.f32 %v2269_v13  ;;  %v1604_v48 = vmul.f32 %v2787_v40, %v3662_v2  ;;  %v1619_v14 = vadd.f32 %v1603_v46, %v3224_v56 }
 0x65e   :  { %v2791_v50 = vpop.eup %2790  ;;  %v1565_v49 = vadd.f32 1.0, %v2789_v47  ;;  %2810 = vpow2.f32 %v2267_v34  ;;  %v1622_v60 = vadd.f32 %v1606_v38, %v3154_v29 }
 0x65f   :  { %v2793_v57 = vpop.eup %2792  ;;  %v1563_v52 = vadd.f32 1.0, %v2791_v50  ;;  %v1620_v53 = vadd.f32 %v1604_v48, %v3149_v20 }
 0x660   :  { %v2795_v7 = vpop.eup %2794  ;;  %2812 = vrcp.f32 %v1565_v49  ;;  %v1566_v19 = vadd.f32 1.0, %v2793_v57  ;;  %v1668_v0 = vpack.c.bf16 %v1622_v60, %v1621_v16 }
 0x661   :  { %v2797_v1 = vpop.eup %2796  ;;  %2814 = vrcp.f32 %v1563_v52  ;;  %v1564_v2 = vadd.f32 1.0, %v2795_v7  ;;  %v1667_v36 = vpack.c.bf16 %v1620_v53, %v1619_v14  ;;  %v2692_v52 = vld [vmem:[%s3827_s9 + $0x40] sm:$0xff]   ;;  %v2693_v14 = vld [vmem:[%s3827_s9 + $0x48] sm:$0xff]   ;;  %v2694_v53 = vld [vmem:[%s3827_s9 + $0x50] sm:$0xff]  }
 0x662   :  { %v2799_v5 = vpop.eup %2798  ;;  %2816 = vrcp.f32 %v1566_v19  ;;  %v1609_v58 = vmul.f32 %v2797_v1, %v3666_v8  ;;  %v2695_v7 = vld [vmem:[%s3827_s9 + $0x58] sm:$0xff]   ;;  %v2696_v19 = vld [vmem:[%s3827_s9 + $0x60] sm:$0xff]   ;;  %v2698_v1 = vld [vmem:[%s3827_s9 + $0x70] sm:$0xff]  }
 0x663   :  { %v2801_v4 = vpop.eup %2800  ;;  %2818 = vrcp.f32 %v1564_v2  ;;  %2502 = vmatprep.subr.bf16.mxu0 %v1667_v36  ;;  %2550 = vmatprep.subr.bf16.mxu1 %v1667_v36  ;;  %v1607_v29 = vmul.f32 %v2799_v5, %v3668_v17  ;;  %v2699_v2 = vld [vmem:[%s3827_s9 + $0x78] sm:$0xff]  }
 0x664   :  { %v2803_v56 = vpop.eup %2802  ;;  %2503 = vmatpush3.bf16.msra.mxu0 %v1667_v36  ;;  %2558 = vmatpush3.bf16.msra.mxu1 %v1667_v36  ;;  %v1610_v20 = vmul.f32 %v2801_v4, %v3670_v24  ;;  %v1625_v8 = vadd.f32 %v1609_v58, %v3184_v54  ;;  %v1710_v36 = vpop.permute.xlu1 %1709 }
 0x665   :  { %v2805_v21 = vpop.eup %2804  ;;  %2504 = vmatprep.subr.bf16.mxu0 %v1668_v0  ;;  %2551 = vmatprep.subr.bf16.mxu1 %v1668_v0  ;;  %v1608_v27 = vmul.f32 %v2803_v56, %v3674_v55  ;;  %v1623_v17 = vadd.f32 %v1607_v29, %v3168_v39  ;;  %v1715_v58 = vpop.permute.xlu0 %1714 }
 0x666   :  { %v2807_v28 = vpop.eup %2806  ;;  %v1569_v41 = vadd.f32 1.0, %v2805_v21  ;;  %v1626_v51 = vadd.f32 %v1610_v20, %v3186_v59 }
 0x667   :  { %v2809_v23 = vpop.eup %2808  ;;  %v1567_v33 = vadd.f32 1.0, %v2807_v28  ;;  %v1624_v15 = vadd.f32 %v1608_v27, %v3170_v44 }
 0x668   :  { %v2811_v22 = vpop.eup %2810  ;;  %2820 = vrcp.f32 %v1569_v41  ;;  %v1570_v24 = vadd.f32 1.0, %v2809_v23  ;;  %2505 = vmatpush3.bf16.msra.mxu0 %v1668_v0  ;;  %2559 = vmatpush3.bf16.msra.mxu1 %v1668_v0  ;;  %v1670_v45 = vpack.c.bf16 %v1626_v51, %v1625_v8  ;;  %v2697_v0 = vld [vmem:[%s3827_s9 + $0x68] sm:$0xff]   ;;  %v1720_v5 = vpop.permute.xlu1 %1719 }
 0x669   :  { %2822 = vrcp.f32 %v1567_v33  ;;  %v1568_v55 = vadd.f32 1.0, %v2811_v22  ;;  %v1669_v18 = vpack.c.bf16 %v1624_v15, %v1623_v17  ;;  %v1730_v29 = vpop.permute.xlu0 %1729 }
 0x66a   :  { %v2813_v13 = vpop.eup %2812  ;;  %2824 = vrcp.f32 %v1570_v24 }
 0x66b   :  { %v2815_v54 = vpop.eup %2814  ;;  %2826 = vrcp.f32 %v1568_v55  ;;  %2506 = vmatprep.subr.bf16.mxu0 %v1669_v18  ;;  %2552 = vmatprep.subr.bf16.mxu1 %v1669_v18  ;;  %v1613_v59 = vmul.f32 %v2813_v13, %v3678_v10 }
 0x66c   :  { %v2817_v39 = vpop.eup %2816  ;;  %2507 = vmatpush3.bf16.msra.mxu0 %v1669_v18  ;;  %2560 = vmatpush3.bf16.msra.mxu1 %v1669_v18  ;;  %v1611_v44 = vmul.f32 %v2815_v54, %v3680_v35  ;;  %v1725_v4 = vpop.permute.xlu1 %1724 }
 0x66d   :  { %v2819_v32 = vpop.eup %2818  ;;  %2508 = vmatprep.subr.bf16.mxu0 %v1670_v45  ;;  %2553 = vmatprep.subr.bf16.mxu1 %v1670_v45  ;;  %v1614_v61 = vmul.f32 %v2817_v39, %v3682_v26  ;;  %v1629_v46 = vadd.f32 %v1613_v59, %v3213_v25  ;;  %v1740_v20 = vpop.permute.xlu0 %1739 }
 0x66e   :  { %v1612_v34 = vmul.f32 %v2819_v32, %v3686_v42  ;;  %v1627_v10 = vadd.f32 %v1611_v44, %v3200_v6 }
 0x66f   :  { %v1630_v40 = vadd.f32 %v1614_v61, %v3215_v31 }
 0x670   :  { %2509 = vmatpush3.bf16.msra.mxu0 %v1670_v45  ;;  %2561 = vmatpush3.bf16.msra.mxu1 %v1670_v45  ;;  %v1628_v38 = vadd.f32 %v1612_v34, %v3202_v12  ;;  %v1735_v56 = vpop.permute.xlu1 %1734 }
 0x671   :  { %v1672_v47 = vpack.c.bf16 %v1630_v40, %v1629_v46  ;;  %v1750_v27 = vpop.permute.xlu0 %1749 }
 0x672   :  { %v2821_v48 = vpop.eup %2820  ;;  %v1671_v35 = vpack.c.bf16 %v1628_v38, %v1627_v10 }
 0x673   :  { %v2823_v50 = vpop.eup %2822  ;;  %v1617_v49 = vmul.f32 %v2821_v48, %v3690_v3 }
 0x674   :  { %v2825_v16 = vpop.eup %2824  ;;  %2510 = vmatprep.subr.bf16.mxu0 %v1671_v35  ;;  %2554 = vmatprep.subr.bf16.mxu1 %v1671_v35  ;;  %v1615_v26 = vmul.f32 %v2823_v50, %v3692_v30  ;;  %v1745_v21 = vpop.permute.xlu1 %1744 }
 0x675   :  { %v2827_v25 = vpop.eup %2826  ;;  %2511 = vmatpush3.bf16.msra.mxu0 %v1671_v35  ;;  %2562 = vmatpush3.bf16.msra.mxu1 %v1671_v35  ;;  %v1618_v31 = vmul.f32 %v2825_v16, %v3694_v9  ;;  %v1633_v12 = vadd.f32 %v1617_v49, %v3253_v63  ;;  %v2686_v63 = vld [vmem:[%s3827_s9 + $0x8] sm:$0xff]   ;;  %v2690_v9 = vld [vmem:[%s3827_s9 + $0x18] sm:$0xff]   ;;  %v1760_v41 = vpop.permute.xlu0 %1759 }
 0x676   :  { %2512 = vmatprep.subr.bf16.mxu0 %v1672_v47  ;;  %2555 = vmatprep.subr.bf16.mxu1 %v1672_v47  ;;  %v1616_v6 = vmul.f32 %v2827_v25, %v3698_v11  ;;  %v1631_v3 = vadd.f32 %v1615_v26, %v3217_v37  ;;  %v2687_v37 = vld [vmem:[%s3827_s9 + $0x28] sm:$0xff]   ;;  %v2691_v11 = vld [vmem:[%s3827_s9 + $0x38] sm:$0xff]  }
 0x677   :  { %v1634_v42 = vadd.f32 %v1618_v31, %v3251_v62  ;;  %v2689_v62 = vld [vmem:[%s3827_s9 + $0x30] sm:$0xff]  }
 0x678   :  { %v1632_v60 = vadd.f32 %v1616_v6, %v3219_v43  ;;  %v2688_v43 = vld [vmem:[%s3827_s9 + $0x10] sm:$0xff]   ;;  %v1755_v28 = vpop.permute.xlu1 %1754  ;;  %s2853_s9 = smov [#allocation2]  }
 0x679   :  { %2513 = vmatpush3.bf16.msra.mxu0 %v1672_v47  ;;  %2563 = vmatpush3.bf16.msra.mxu1 %v1672_v47  ;;  %v1674_v30 = vpack.c.bf16 %v1634_v42, %v1633_v12  ;;  %v1770_v51 = vpop.permute.xlu0 %1769  ;;  %s2161_s1 = sshll.u32 %s2853_s9, 4  ;;  %s2162_s1 = int_to_ptr.vmem [resolvable:$true] %s2161_s1 }
 0x67a   :  { %v1673_v57 = vpack.c.bf16 %v1632_v60, %v1631_v3  ;;  %s2828_s8 = scalar_lea.vmem %s2162_s1, 4096  ;;  %p2833_p1 = scmp.lt.s32.totalorder %s2162_s1, %s2162_s1 }
 0x67b   :  { %p2829_p0 = scmp.ne.s32.totalorder %s2162_s1, %s2828_s8  ;;  %p2834_p2 = scmp.lt.s32.totalorder %s2828_s8, %s2828_s8 }
 0x67c   :  { %2514 = vmatprep.subr.bf16.mxu0 %v1673_v57  ;;  %2556 = vmatprep.subr.bf16.mxu1 %v1673_v57  ;;  %v1765_v8 = vpop.permute.xlu1 %1764 }
 0x67d   :  { %2515 = vmatpush3.bf16.msra.mxu0 %v1673_v57  ;;  %2564 = vmatpush3.bf16.msra.mxu1 %v1673_v57  ;;  %v1780_v33 = vpop.permute.xlu0 %1779  ;;  %p2835_p3 = por %p2834_p2, %p2833_p1 }
 0x67e   :  { %2516 = vmatprep.subr.bf16.mxu0 %v1674_v30  ;;  %2557 = vmatprep.subr.bf16.mxu1 %v1674_v30 }
 0x67f   :  { %p2836_p4 = pnand %p2835_p3, %p2829_p0 }
 0x680   :  { %v1775_v23 = vpop.permute.xlu1 %1774 }
 0x681   :  { %2517 = vmatpush3.bf16.msra.mxu0 %v1674_v30  ;;  %2565 = vmatpush3.bf16.msra.mxu1 %v1674_v30  ;;  %v1790_v15 = vpop.permute.xlu0 %1789 }
 0x684   :  { %2519 = vmatmul.mubr.bf16.vlgmr.msra.gmra.mrb[64].mxu0 %v2686_v63  ;;  %2527 = vmatmul.mubr.bf16.vlgmr.msra.gmra.mrb[64].mxu1 %v2687_v37  ;;  %v1785_v17 = vpop.permute.xlu1 %1784 }
 0x685   :  { %2522 = vmatprep.mubr.bf16.mxu0 %v2688_v43  ;;  %2530 = vmatprep.mubr.bf16.mxu1 %v2689_v62  ;;  %v1800_v24 = vpop.permute.xlu0 %1799 }
 0x688   :  { %v3803_v22 = vpop.permute.xlu1 %1794 }
 0x689   :  { %v1810_v35 = vpop.permute.xlu0 %1809 }
 0x68c   :  { %2523 = vmatmul.mubr.bf16.gmra.mrb[68].mxu0 %v2690_v9  ;;  %2531 = vmatmul.mubr.bf16.gmra.mrb[68].mxu1 %v2691_v11  ;;  %v1805_v48 = vpop.permute.xlu1 %1804 }
 0x68d   :  { %2534 = vmatprep.mubr.bf16.mxu1 %v2692_v52  ;;  %v1820_v9 = vpop.permute.xlu0 %1819 }
 0x690   :  { %v1815_v37 = vpop.permute.xlu1 %1814 }
 0x694   :  { %2535 = vmatmul.mubr.bf16.gmra.mrb[72].mxu1 %v2693_v14 }
 0x695   :  { %2538 = vmatprep.mubr.bf16.mxu1 %v2694_v53  ;;  %v1825_v53 = vpop.permute.xlu1 %1824 }
 0x69c   :  { %2539 = vmatmul.mubr.bf16.gmra.mrb[76].mxu1 %v2695_v7 }
 0x69d   :  { %2542 = vmatprep.mubr.bf16.mxu1 %v2696_v19 }
 0x6a4   :  { %2543 = vmatmul.mubr.bf16.gmra.mrb[80].mxu1 %v2697_v0 }
 0x6a5   :  { %2546 = vmatprep.mubr.bf16.mxu1 %v2698_v1 }
 0x6ac   :  { %2547 = vmatmul.mubr.bf16.gmra.mrb[84].mxu1 %v2699_v2 }
 0x757   :  { %v2520_v45 = vpop.f32.mrb[64].mxu0  ;;  %v2528_v55 = vpop.f32.mrb[64].mxu1 }
 0x758   :  { %v2006_v18 = vadd.f32 %v2520_v45, %v1720_v5  ;;  %v2038_v13 = vadd.f32 %v2528_v55, %v1760_v41  ;;  %v1997_v54 = vpop.f32.mrb[65].mxu0  ;;  %v2029_v59 = vpop.f32.mrb[65].mxu1 }
 0x759   :  { %v1998_v39 = vadd.f32 %v1997_v54, %v1710_v36  ;;  %v2030_v44 = vadd.f32 %v2029_v59, %v1750_v27  ;;  %v2521_v32 = vpop.f32.mrb[66].mxu0  ;;  %v2529_v61 = vpop.f32.mrb[66].mxu1 }
 0x75a   :  { %2126 = vst [vmem:[#allocation2 + $0x10] sm:$0xff] %v2006_v18  ;;  %2134 = vst [vmem:[#allocation2 + $0x50] sm:$0xff] %v2038_v13  ;;  %v2009_v34 = vadd.f32 %v2521_v32, %v1725_v4  ;;  %v2041_v46 = vadd.f32 %v2529_v61, %v1765_v8  ;;  %v2000_v40 = vpop.f32.mrb[67].mxu0  ;;  %v2032_v10 = vpop.f32.mrb[67].mxu1 }
 0x75b   :  { %2124 = vst [vmem:[#allocation2] sm:$0xff] %v1998_v39  ;;  %2132 = vst [vmem:[#allocation2 + $0x40] sm:$0xff] %v2030_v44  ;;  %v2001_v38 = vadd.f32 %v2000_v40, %v1715_v58  ;;  %v2033_v47 = vadd.f32 %v2032_v10, %v1755_v28  ;;  %v1830_v36 = vpop.permute.xlu0 %1829  ;;  %v1835_v5 = vpop.permute.xlu1 %1834 }
 0x75c   :  { %2127 = vst [vmem:[#allocation2 + $0x18] sm:$0xff] %v2009_v34  ;;  %2135 = vst [vmem:[#allocation2 + $0x58] sm:$0xff] %v2041_v46 }
 0x75d   :  { %2125 = vst [vmem:[#allocation2 + $0x8] sm:$0xff] %v2001_v38  ;;  %2133 = vst [vmem:[#allocation2 + $0x48] sm:$0xff] %v2033_v47 }
 0x75f   :  { %v2524_v50 = vpop.f32.mrb[68].mxu0  ;;  %v2532_v49 = vpop.f32.mrb[68].mxu1 }
 0x760   :  { %v2022_v16 = vadd.f32 %v2524_v50, %v1740_v20  ;;  %v2054_v26 = vadd.f32 %v2532_v49, %v1780_v33  ;;  %v2013_v25 = vpop.f32.mrb[69].mxu0  ;;  %v2045_v31 = vpop.f32.mrb[69].mxu1 }
 0x761   :  { %v2014_v6 = vadd.f32 %v2013_v25, %v1730_v29  ;;  %v2046_v12 = vadd.f32 %v2045_v31, %v1770_v51  ;;  %v2525_v42 = vpop.f32.mrb[70].mxu0  ;;  %v2533_v3 = vpop.f32.mrb[70].mxu1 }
 0x762   :  { %2130 = vst [vmem:[#allocation2 + $0x30] sm:$0xff] %v2022_v16  ;;  %2138 = vst [vmem:[#allocation2 + $0x70] sm:$0xff] %v2054_v26  ;;  %v2025_v60 = vadd.f32 %v2525_v42, %v1745_v21  ;;  %v2057_v30 = vadd.f32 %v2533_v3, %v1785_v17  ;;  %v2016_v57 = vpop.f32.mrb[71].mxu0  ;;  %v2048_v63 = vpop.f32.mrb[71].mxu1 }
 0x763   :  { %2128 = vst [vmem:[#allocation2 + $0x20] sm:$0xff] %v2014_v6  ;;  %2136 = vst [vmem:[#allocation2 + $0x60] sm:$0xff] %v2046_v12  ;;  %v2017_v43 = vadd.f32 %v2016_v57, %v1735_v56  ;;  %v2049_v62 = vadd.f32 %v2048_v63, %v1775_v23  ;;  %v1840_v28 = vpop.permute.xlu0 %1839  ;;  %v1845_v8 = vpop.permute.xlu1 %1844 }
 0x764   :  { %2131 = vst [vmem:[#allocation2 + $0x38] sm:$0xff] %v2025_v60  ;;  %2139 = vst [vmem:[#allocation2 + $0x78] sm:$0xff] %v2057_v30 }
 0x765   :  { %2129 = vst [vmem:[#allocation2 + $0x28] sm:$0xff] %v2017_v43  ;;  %2137 = vst [vmem:[#allocation2 + $0x68] sm:$0xff] %v2049_v62 }
 0x767   :  { %v2536_v11 = vpop.f32.mrb[72].mxu1  ;;  %v1850_v17 = vpop.permute.xlu0 %1849 }
 0x768   :  { %v2070_v52 = vadd.f32 %v2536_v11, %v1800_v24  ;;  %v2061_v14 = vpop.f32.mrb[73].mxu1  ;;  %v1855_v55 = vpop.permute.xlu1 %1854 }
 0x769   :  { %v2062_v7 = vadd.f32 %v2061_v14, %v1790_v15  ;;  %v2537_v19 = vpop.f32.mrb[74].mxu1 }
 0x76a   :  { %2142 = vst [vmem:[#allocation2 + $0x90] sm:$0xff] %v2070_v52  ;;  %v2073_v0 = vadd.f32 %v2537_v19, %v1805_v48  ;;  %v2064_v1 = vpop.f32.mrb[75].mxu1 }
 0x76b   :  { %2140 = vst [vmem:[#allocation2 + $0x80] sm:$0xff] %v2062_v7  ;;  %v2065_v2 = vadd.f32 %v2064_v1, %v3803_v22  ;;  %v1860_v13 = vpop.permute.xlu0 %1859 }
 0x76c   :  { %2143 = vst [vmem:[#allocation2 + $0x98] sm:$0xff] %v2073_v0  ;;  %v1865_v44 = vpop.permute.xlu1 %1864 }
 0x76d   :  { %2141 = vst [vmem:[#allocation2 + $0x88] sm:$0xff] %v2065_v2 }
 0x76f   :  { %v2540_v58 = vpop.f32.mrb[76].mxu1 }
 0x770   :  { %v2086_v4 = vadd.f32 %v2540_v58, %v1820_v9  ;;  %v2077_v29 = vpop.f32.mrb[77].mxu1 }
 0x771   :  { %v2078_v56 = vadd.f32 %v2077_v29, %v1810_v35  ;;  %v2541_v20 = vpop.f32.mrb[78].mxu1 }
 0x772   :  { %2146 = vst [vmem:[#allocation2 + $0xb0] sm:$0xff] %v2086_v4  ;;  %v2089_v21 = vadd.f32 %v2541_v20, %v1825_v53  ;;  %v2080_v27 = vpop.f32.mrb[79].mxu1 }
 0x773   :  { %2144 = vst [vmem:[#allocation2 + $0xa0] sm:$0xff] %v2078_v56  ;;  %v2081_v41 = vadd.f32 %v2080_v27, %v1815_v37 }
 0x774   :  { %2147 = vst [vmem:[#allocation2 + $0xb8] sm:$0xff] %v2089_v21 }
 0x775   :  { %2145 = vst [vmem:[#allocation2 + $0xa8] sm:$0xff] %v2081_v41 }
 0x777   :  { %v2544_v51 = vpop.f32.mrb[80].mxu1 }
 0x778   :  { %v2102_v23 = vadd.f32 %v2544_v51, %v1840_v28  ;;  %v2093_v33 = vpop.f32.mrb[81].mxu1 }
 0x779   :  { %v2094_v15 = vadd.f32 %v2093_v33, %v1830_v36  ;;  %v2545_v22 = vpop.f32.mrb[82].mxu1 }
 0x77a   :  { %2150 = vst [vmem:[#allocation2 + $0xd0] sm:$0xff] %v2102_v23  ;;  %v2105_v24 = vadd.f32 %v2545_v22, %v1845_v8  ;;  %v2096_v45 = vpop.f32.mrb[83].mxu1 }
 0x77b   :  { %2148 = vst [vmem:[#allocation2 + $0xc0] sm:$0xff] %v2094_v15  ;;  %v2097_v18 = vadd.f32 %v2096_v45, %v1835_v5 }
 0x77c   :  { %2151 = vst [vmem:[#allocation2 + $0xd8] sm:$0xff] %v2105_v24 }
 0x77d   :  { %2149 = vst [vmem:[#allocation2 + $0xc8] sm:$0xff] %v2097_v18 }
 0x77f   :  { %v2548_v54 = vpop.f32.mrb[84].mxu1 }
 0x780   :  { %v2118_v59 = vadd.f32 %v2548_v54, %v1860_v13  ;;  %v2109_v39 = vpop.f32.mrb[85].mxu1 }
 0x781   :  { %v2110_v32 = vadd.f32 %v2109_v39, %v1850_v17  ;;  %v2549_v61 = vpop.f32.mrb[86].mxu1 }
 0x782   :  { %2154 = vst [vmem:[#allocation2 + $0xf0] sm:$0xff] %v2118_v59  ;;  %v2121_v34 = vadd.f32 %v2549_v61, %v1865_v44  ;;  %v2112_v46 = vpop.f32.mrb[87].mxu1 }
 0x783   :  { %2152 = vst [vmem:[#allocation2 + $0xe0] sm:$0xff] %v2110_v32  ;;  %v2113_v40 = vadd.f32 %v2112_v46, %v1855_v55 }
 0x784   :  { %2155 = vst [vmem:[#allocation2 + $0xf8] sm:$0xff] %v2121_v34 }
 0x785   :  { %2153 = vst [vmem:[#allocation2 + $0xe8] sm:$0xff] %v2113_v40 }
 0x786   :  { %2839 = shalt.err (!%p2836_p4)
}
 0x787   :  { %s2840_s18 = scalar_lea.hbm %s3830_s12, 4096 }
 0x788   :  { %p2841_p5 = scmp.ne.s32.totalorder %s3830_s12, %s2840_s18  ;;  %p2844_p6 = scmp.lt.u32.totalorder %s2840_s18, %s3830_s12 }
 0x78a   :  { %p2846_p7 = pnand %p2844_p6, %p2841_p5 }
 0x78c   :  { %2849 = shalt.err (!%p2846_p7)
}
 0x78d   :  { %s2854_s23 = smov 128   ;;  %s2855_s24 = smov 8  }
 0x78e   :  { %2167 = dma.vmem_to_hbm [thread:$0]  %s2162_s1, 4096, %s3830_s12, [#allocation3], %s2854_s23, %s2854_s23, %s2855_s24  }
 0x78f   :  { %2850 = dma.done.wait [#allocation3], 4096  }
 0x790   :  { %2851 = vsyncadd [#allocation3], 4294963200 }
 0x791   :  { %2171 = vsyncpa [#allocation3], 1 }

</bundles_post_ra>
